<compile_context>
chip_gen: v5e
topology: v5e:2x2
jax: 0.10.0
libtpu: 0.0.40
codegen_flags: <defaults>
</compile_context>

<pallas_src>
import jax
import jax.numpy as jnp
from jax.experimental import pallas as pl
from jax.experimental.pallas import tpu as pltpu

_LPACK = 128  # distances packed per lane-dense output row


def _packed_kernel(dist_ref, sel_ref, out_ref):
    # dist_ref: (bpr, 128)       lane-dense block of packed distances
    # sel_ref : (128, 128*D)     block-diagonal kron(I_128, weight), resident
    # out_ref : (bpr, 128*D)     lane-dense packed output
    # out[r, c*D + j] = dist[r, c] * weight[j]; every other dot term is 0.0,
    # so the f32-accumulated result is bit-exact vs. the broadcast multiply.
    out_ref[...] = jnp.dot(
        dist_ref[...], sel_ref[...], preferred_element_type=jnp.float32
    ).astype(out_ref.dtype)


def _broadcast_kernel(dist_ref, w_ref, out_ref):
    # Fallback (D > 64): (bpr, 1) * (1, D) broadcast multiply.
    out_ref[...] = (dist_ref[...] * w_ref[...]).astype(out_ref.dtype)


def _round_down(x, m):
    return max(m, (x // m) * m)


def _pick_block(total_rows, requested_rows, row_bytes, sublane_mult):
    """Rows per grid step: big enough to amortize the ~0.35us per-step
    overhead, small enough that a double-buffered output tile stays <= ~8 MiB
    (v7x 64 MiB VMEM), with >= 2 steps when possible so v7x megacore can
    shard the 'parallel' row axis across both TensorCores."""
    max_by_vmem = max(sublane_mult, (8 * 1024 * 1024) // row_bytes)
    bpr = min(requested_rows, total_rows, max_by_vmem)
    if total_rows >= 4 * sublane_mult:
        bpr = min(bpr, pl.cdiv(total_rows, 2))  # guarantee >= 2 grid steps
    if bpr < total_rows:
        bpr = _round_down(bpr, sublane_mult)    # sublane tiling rule
    else:
        bpr = total_rows                         # single block == full dims
    return bpr


def distance_embedding_s(dist, weight, *, block_rows=32768, out_dtype=None):
    """out[i, j] = dist[i] * weight[0, j].  dist: (N,), weight: (1, D) -> (N, D).

    block_rows: logical dist rows per grid step (primary tuning knob).
    out_dtype:  optional narrower store dtype (e.g. jnp.bfloat16) -- halves the
      HBM store traffic this kernel is bound by; math still accumulates in f32.
      Default keeps the promoted input dtype (exact vs. the PyTorch reference).
    """
    n = dist.shape[0]
    d = weight.shape[1]
    compute_dtype = jnp.promote_types(dist.dtype, weight.dtype)
    out_dtype = compute_dtype if out_dtype is None else jnp.dtype(out_dtype)
    out_isize = jnp.dtype(out_dtype).itemsize
    sublane_mult = max(8, 32 // max(out_isize, 1))  # 8 f32 / 16 bf16 / 32 int8

    if 0 < d <= 64:
        # ---- packed, lane-dense path (the module's D=32 lands here) ----
        n_pad = pl.cdiv(n, _LPACK) * _LPACK
        dist_p = dist.astype(compute_dtype)
        if n_pad != n:
            dist_p = jnp.pad(dist_p, (0, n_pad - n))
        r2 = n_pad // _LPACK
        dist2 = dist_p.reshape(r2, _LPACK)                  # free, row-major
        width = _LPACK * d
        # sel[c, c*D:(c+1)*D] = weight[0, :]; zero elsewhere.
        sel = jnp.kron(jnp.eye(_LPACK, dtype=compute_dtype),
                       weight.astype(compute_dtype))        # (128, 128*D)

        req = max(1, block_rows // _LPACK)
        row_bytes = width * out_isize
        bpr = _pick_block(r2, req, row_bytes, sublane_mult)

        out_tile = bpr * row_bytes
        dist_tile = bpr * _LPACK * jnp.dtype(compute_dtype).itemsize
        sel_bytes = sel.size * sel.dtype.itemsize
        vmem_need = 2 * (out_tile + dist_tile + sel_bytes) + (2 << 20)
        vmem_limit = int(min(max(vmem_need, 24 << 20), 48 << 20))

        cost = pl.CostEstimate(
            flops=2 * r2 * _LPACK * width,
            transcendentals=0,
            bytes_accessed=int(n_pad * d * out_isize
                               + dist2.size * dist2.dtype.itemsize
                               + sel_bytes),
        )

        out_packed = pl.pallas_call(
            _packed_kernel,
            out_shape=jax.ShapeDtypeStruct((r2, width), out_dtype),
            grid_spec=pl.GridSpec(
                grid=(pl.cdiv(r2, bpr),),
                in_specs=[
                    pl.BlockSpec((bpr, _LPACK), lambda i: (i, 0)),
                    # Same block index every step -> fetched once, resident.
                    pl.BlockSpec((_LPACK, width), lambda i: (0, 0)),
                ],
                out_specs=pl.BlockSpec((bpr, width), lambda i: (i, 0)),
            ),
            compiler_params=pltpu.CompilerParams(
                dimension_semantics=("parallel",),
                vmem_limit_bytes=vmem_limit,
            ),
            cost_estimate=cost,
        )(dist2, sel)

        out = out_packed.reshape(n_pad, d)   # row-major reshape, no data move
        if n_pad != n:
            # Documented slow path: one extra HBM read+write pass over (N, D).
            # Use N % 128 == 0 at the call site to avoid it.
            out = out[:n]
        return out

    # ---- fallback path (D > 64): plain tiled broadcast multiply ----
    # TODO(synk): for 64 < D < 128 (or D % 128 != 0) the stores here are
    # masked vst.msk; a composite lane packing would be needed to densify.
    dist_col = dist.reshape(n, 1).astype(compute_dtype)
    br = _pick_block(n, block_rows, d * out_isize, sublane_mult)
    return pl.pallas_call(
        _broadcast_kernel,
        out_shape=jax.ShapeDtypeStruct((n, d), out_dtype),
        grid_spec=pl.GridSpec(
            grid=(pl.cdiv(n, br),),
            in_specs=[
                pl.BlockSpec((br, 1), lambda i: (i, 0)),
                pl.BlockSpec((1, d), lambda i: (0, 0)),
            ],
            out_specs=pl.BlockSpec((br, d), lambda i: (i, 0)),
        ),
        compiler_params=pltpu.CompilerParams(
            dimension_semantics=("parallel",),
            vmem_limit_bytes=48 << 20,
        ),
    )(dist_col, weight.astype(compute_dtype))


if __name__ == "__main__":
    key = jax.random.PRNGKey(0)
    k_dist, k_w = jax.random.split(key)

    N = 8            # batch of distances
    EMBED_DIM = 32   # self.dist_dim

    # Deterministic synthetic parameter (nn.Embedding default init ~ N(0, 1)).
    weight = jax.random.normal(k_w, (1, EMBED_DIM), dtype=jnp.float32)
    dist = jax.random.uniform(k_dist, (N,), dtype=jnp.float32,
                              minval=0.0, maxval=10.0)

    out = distance_embedding_s(dist, weight)
    out = jax.block_until_ready(out)

    # Reference check (pure JAX, mirrors the PyTorch forward).
    ref = dist[:, None] * weight  # (N, 1) * (1, D) -> (N, D)
    assert out.shape == (N, EMBED_DIM)
    assert jnp.allclose(out, ref, atol=1e-6, rtol=1e-6)

    print("KERNEL_OK")
</pallas_src>

<mosaic_0001>
module attributes {stable_mosaic.version = 11 : i64} {
  func.func @_packed_kernel(%arg0: i32, %arg1: memref<1x128xf32, #tpu.memory_space<vmem>>, %arg2: memref<128x4096xf32, #tpu.memory_space<vmem>>, %arg3: memref<1x4096xf32, #tpu.memory_space<vmem>>) attributes {dimension_semantics = [#tpu.dimension_semantics<parallel>], iteration_bounds = array<i64: 1>, scalar_prefetch = 0 : i64, scratch_operands = 0 : i64, tpu.core_type = #tpu.core_type<tc>, window_params = [{transform_indices = @transform_0, window_bounds = array<i64: 1, 128>}, {pipeline_mode = #tpu.pipeline_mode<synchronous>, transform_indices = @transform_1, window_bounds = array<i64: 128, 4096>}, {transform_indices = @transform_2, window_bounds = array<i64: 1, 4096>}]} {
    %c0 = arith.constant 0 : index
    %c0_0 = arith.constant 0 : index
    %0 = vector.load %arg1[%c0, %c0_0] : memref<1x128xf32, #tpu.memory_space<vmem>>, vector<1x128xf32>
    %c0_1 = arith.constant 0 : index
    %c0_2 = arith.constant 0 : index
    %1 = vector.load %arg2[%c0_1, %c0_2] : memref<128x4096xf32, #tpu.memory_space<vmem>>, vector<128x4096xf32>
    %cst = arith.constant dense<0.000000e+00> : vector<1x4096xf32>
    %2 = tpu.matmul %0, %1, %cst {dimension_numbers = #tpu.dot_dimension_numbers<[1], [0], [0], [1], [0, 0, 1, 1], [], []>} : vector<1x128xf32>, vector<128x4096xf32>, vector<1x4096xf32> -> vector<1x4096xf32>
    %c0_3 = arith.constant 0 : index
    %c0_4 = arith.constant 0 : index
    %3 = vector.load %arg3[%c0_3, %c0_4] : memref<1x4096xf32, #tpu.memory_space<vmem>>, vector<1x4096xf32>
    tpu.vector_store %arg3[%c0_3, %c0_4], %2 {strides = array<i32>} : memref<1x4096xf32, #tpu.memory_space<vmem>>, vector<1x4096xf32>,
    return
  }
  func.func @transform_0(%arg0: i32) -> (i32, i32) {
    %c0_i32 = arith.constant 0 : i32
    %c0_i32_0 = arith.constant 0 : i32
    return %arg0, %c0_i32 : i32, i32
  }
  func.func @transform_1(%arg0: i32) -> (i32, i32) {
    %c0_i32 = arith.constant 0 : i32
    %c0_i32_0 = arith.constant 0 : i32
    %c0_i32_1 = arith.constant 0 : i32
    return %c0_i32, %c0_i32_0 : i32, i32
  }
  func.func @transform_2(%arg0: i32) -> (i32, i32) {
    %c0_i32 = arith.constant 0 : i32
    %c0_i32_0 = arith.constant 0 : i32
    return %arg0, %c0_i32 : i32, i32
  }
}

</mosaic_0001>

<bundles_post_ra>
// kernel: tpu_custom_call.1
= control target key start
LH: loop header
LB: loop body
LE: loop exit
PB: predicated region body
PF: predicated region fallthrough
CT: control target
= control target key end

     0   :  { %7 = vsyncpa [#allocation3], 0  ;;  %s1499_s0 = inlined_call_operand.hbm [shape: f32[1,128], index: 0, kind: input, shape index: {}]   ;;  %s1500_s1 = inlined_call_operand.hbm [shape: f32[128,4096], index: 1, kind: input, shape index: {}]   ;;  %s1501_s2 = inlined_call_operand.hbm [shape: f32[1,4096], index: 2, kind: output, shape index: {}]  }
   0x1   :  { %8 = vsyncpa [#allocation6], 0 }
   0x2   :  { %9 = vsyncpa [#allocation4], 0  ;;  %s15_s11 = sshll.u32 %s1499_s0, 4  ;;  %s1400_s12 = smov [#allocation2]   ;;  %s16_s11 = int_to_ptr.hbm [resolvable:$true] %s15_s11 }
   0x3   :  { %s17_s13 = sshll.u32 %s1400_s12, 4  ;;  %s25_s16 = sshll.u32 %s1500_s1, 4  ;;  %s18_s13 = int_to_ptr.vmem [resolvable:$true] %s17_s13  ;;  %s26_s16 = int_to_ptr.hbm [resolvable:$true] %s25_s16 }
   0x4   :  { %20 = dma.hbm_to_vmem [thread:$0]  %s16_s11, 16, %s18_s13, [#allocation3]  }
   0x5   :  { %s1401_s17 = smov [#allocation5]   ;;  %s1402_s19 = smov 4096  }
   0x6   :  { %s27_s18 = sshll.u32 %s1401_s17, 4  ;;  %s1403_s20 = smov 256   ;;  %s28_s18 = int_to_ptr.vmem [resolvable:$true] %s27_s18 }
   0x7   :  { %33 = dma.hbm_to_vmem [thread:$0]  %s26_s16, 65536, %s28_s18, [#allocation6], %s1402_s19, %s1402_s19, %s1403_s20  }
   0x8   :  { %1394 = dma.done.wait [#allocation3], 16  }
   0x9   :  { %1395 = vsyncadd [#allocation3], 4294967280 }
   0xa   :  { %1396 = dma.done.wait [#allocation6], 65536  }
   0xb   :  { %1397 = vsyncadd [#allocation6], 4294901760  ;;  %v525_v0 = vld [vmem:[#allocation5 + $0xf10] sm:$0xff]  ;;  %v526_v1 = vld [vmem:[#allocation5 + $0xf18] sm:$0xff]  ;;  %vm1255_vm0 = vcmask 1040384   ;;  %vm1257_vm1 = vcmask 1042434  }
   0xc   :  { %v493_v2 = vld [vmem:[#allocation5 + $0xe10] sm:$0xff]  ;;  %595 = vmatpush.msra.mxu2 %v525_v0  ;;  %615 = vmatpush.msra.mxu3 %v526_v1  ;;  %v494_v3 = vld [vmem:[#allocation5 + $0xe18] sm:$0xff]  ;;  %v523_v6 = vld [vmem:[#allocation5 + $0xf00] sm:$0xff]  ;;  %vm1259_vm2 = vcmask 1041408   ;;  %vm1263_vm3 = vcmask 1046534   ;;  %vm1261_vm4 = vcmask 1044484  }
   0xd   :  { %v461_v4 = vld [vmem:[#allocation5 + $0xd10] sm:$0xff]  ;;  %v462_v5 = vld [vmem:[#allocation5 + $0xd18] sm:$0xff]  ;;  %v524_v7 = vld [vmem:[#allocation5 + $0xf08] sm:$0xff]  ;;  %555 = vmatpush.msra.mxu0 %v523_v6  ;;  %vm1265_vm5 = vcmask 1045508   ;;  %vm1267_vm6 = vcmask 1043456   ;;  %s1404_s0 = smov [#allocation7]  }
   0xe   :  { %596 = vmatpush.msra.mxu2 %v493_v2  ;;  %616 = vmatpush.msra.mxu3 %v494_v3  ;;  %v491_v8 = vld [vmem:[#allocation5 + $0xe00] sm:$0xff]  ;;  %v492_v9 = vld [vmem:[#allocation5 + $0xe08] sm:$0xff]  ;;  %v429_v10 = vld [vmem:[#allocation5 + $0xc10] sm:$0xff]  ;;  %s1303_s1 = sshll.u32 %s1404_s0, 4  ;;  %s1305_s23 = sshll.u32 %s1501_s2, 4  ;;  %s1304_s1 = int_to_ptr.vmem [resolvable:$true] %s1303_s1  ;;  %s1306_s23 = int_to_ptr.hbm [resolvable:$true] %s1305_s23 }
   0xf   :  { %575 = vmatpush.msra.mxu1 %v524_v7  ;;  %v430_v11 = vld [vmem:[#allocation5 + $0xc18] sm:$0xff]  ;;  %v459_v12 = vld [vmem:[#allocation5 + $0xd00] sm:$0xff]  ;;  %v460_v13 = vld [vmem:[#allocation5 + $0xd08] sm:$0xff]  ;;  %556 = vmatpush.msra.mxu0 %v491_v8 }
  0x10   :  { %597 = vmatpush.msra.mxu2 %v461_v4  ;;  %617 = vmatpush.msra.mxu3 %v462_v5  ;;  %v397_v14 = vld [vmem:[#allocation5 + $0xb10] sm:$0xff]  ;;  %v398_v15 = vld [vmem:[#allocation5 + $0xb18] sm:$0xff]  ;;  %v427_v16 = vld [vmem:[#allocation5 + $0xc00] sm:$0xff] }
  0x11   :  { %576 = vmatpush.msra.mxu1 %v492_v9  ;;  %v428_v17 = vld [vmem:[#allocation5 + $0xc08] sm:$0xff]  ;;  %557 = vmatpush.msra.mxu0 %v459_v12  ;;  %v365_v18 = vld [vmem:[#allocation5 + $0xa10] sm:$0xff]  ;;  %v366_v19 = vld [vmem:[#allocation5 + $0xa18] sm:$0xff] }
  0x12   :  { %598 = vmatpush.msra.mxu2 %v429_v10  ;;  %618 = vmatpush.msra.mxu3 %v430_v11  ;;  %v395_v20 = vld [vmem:[#allocation5 + $0xb00] sm:$0xff]  ;;  %v396_v21 = vld [vmem:[#allocation5 + $0xb08] sm:$0xff]  ;;  %v333_v22 = vld [vmem:[#allocation5 + $0x910] sm:$0xff] }
  0x13   :  { %577 = vmatpush.msra.mxu1 %v460_v13  ;;  %558 = vmatpush.msra.mxu0 %v427_v16  ;;  %v334_v23 = vld [vmem:[#allocation5 + $0x918] sm:$0xff]  ;;  %v363_v24 = vld [vmem:[#allocation5 + $0xa00] sm:$0xff]  ;;  %v364_v25 = vld [vmem:[#allocation5 + $0xa08] sm:$0xff] }
  0x14   :  { %599 = vmatpush.msra.mxu2 %v397_v14  ;;  %619 = vmatpush.msra.mxu3 %v398_v15  ;;  %v301_v26 = vld [vmem:[#allocation5 + $0x810] sm:$0xff]  ;;  %v302_v27 = vld [vmem:[#allocation5 + $0x818] sm:$0xff]  ;;  %v331_v28 = vld [vmem:[#allocation5 + $0x900] sm:$0xff] }
  0x15   :  { %578 = vmatpush.msra.mxu1 %v428_v17  ;;  %559 = vmatpush.msra.mxu0 %v395_v20  ;;  %v332_v29 = vld [vmem:[#allocation5 + $0x908] sm:$0xff]  ;;  %v269_v30 = vld [vmem:[#allocation5 + $0x710] sm:$0xff]  ;;  %v270_v31 = vld [vmem:[#allocation5 + $0x718] sm:$0xff] }
  0x16   :  { %600 = vmatpush.msra.mxu2 %v365_v18  ;;  %620 = vmatpush.msra.mxu3 %v366_v19  ;;  %v299_v32 = vld [vmem:[#allocation5 + $0x800] sm:$0xff]  ;;  %v300_v33 = vld [vmem:[#allocation5 + $0x808] sm:$0xff]  ;;  %v237_v34 = vld [vmem:[#allocation5 + $0x610] sm:$0xff] }
  0x17   :  { %579 = vmatpush.msra.mxu1 %v396_v21  ;;  %560 = vmatpush.msra.mxu0 %v363_v24  ;;  %v238_v35 = vld [vmem:[#allocation5 + $0x618] sm:$0xff]  ;;  %v267_v36 = vld [vmem:[#allocation5 + $0x700] sm:$0xff]  ;;  %v268_v37 = vld [vmem:[#allocation5 + $0x708] sm:$0xff] }
  0x18   :  { %601 = vmatpush.msra.mxu2 %v333_v22  ;;  %621 = vmatpush.msra.mxu3 %v334_v23  ;;  %v205_v38 = vld [vmem:[#allocation5 + $0x510] sm:$0xff]  ;;  %v206_v39 = vld [vmem:[#allocation5 + $0x518] sm:$0xff]  ;;  %v235_v40 = vld [vmem:[#allocation5 + $0x600] sm:$0xff] }
  0x19   :  { %580 = vmatpush.msra.mxu1 %v364_v25  ;;  %561 = vmatpush.msra.mxu0 %v331_v28  ;;  %v236_v41 = vld [vmem:[#allocation5 + $0x608] sm:$0xff]  ;;  %v173_v42 = vld [vmem:[#allocation5 + $0x410] sm:$0xff]  ;;  %v174_v43 = vld [vmem:[#allocation5 + $0x418] sm:$0xff] }
  0x1a   :  { %602 = vmatpush.msra.mxu2 %v301_v26  ;;  %622 = vmatpush.msra.mxu3 %v302_v27  ;;  %v203_v44 = vld [vmem:[#allocation5 + $0x500] sm:$0xff]  ;;  %v204_v45 = vld [vmem:[#allocation5 + $0x508] sm:$0xff]  ;;  %v141_v46 = vld [vmem:[#allocation5 + $0x310] sm:$0xff] }
  0x1b   :  { %581 = vmatpush.msra.mxu1 %v332_v29  ;;  %562 = vmatpush.msra.mxu0 %v299_v32  ;;  %v142_v47 = vld [vmem:[#allocation5 + $0x318] sm:$0xff]  ;;  %v171_v48 = vld [vmem:[#allocation5 + $0x400] sm:$0xff]  ;;  %v172_v49 = vld [vmem:[#allocation5 + $0x408] sm:$0xff] }
  0x1c   :  { %603 = vmatpush.msra.mxu2 %v269_v30  ;;  %623 = vmatpush.msra.mxu3 %v270_v31  ;;  %v109_v50 = vld [vmem:[#allocation5 + $0x210] sm:$0xff]  ;;  %v110_v51 = vld [vmem:[#allocation5 + $0x218] sm:$0xff]  ;;  %v139_v52 = vld [vmem:[#allocation5 + $0x300] sm:$0xff] }
  0x1d   :  { %582 = vmatpush.msra.mxu1 %v300_v33  ;;  %563 = vmatpush.msra.mxu0 %v267_v36  ;;  %v140_v53 = vld [vmem:[#allocation5 + $0x308] sm:$0xff]  ;;  %v77_v54 = vld [vmem:[#allocation5 + $0x110] sm:$0xff]  ;;  %v78_v55 = vld [vmem:[#allocation5 + $0x118] sm:$0xff] }
  0x1e   :  { %604 = vmatpush.msra.mxu2 %v237_v34  ;;  %624 = vmatpush.msra.mxu3 %v238_v35  ;;  %v107_v56 = vld [vmem:[#allocation5 + $0x200] sm:$0xff]  ;;  %v108_v57 = vld [vmem:[#allocation5 + $0x208] sm:$0xff]  ;;  %v45_v58 = vld [vmem:[#allocation5 + $0x10] sm:$0xff] }
  0x1f   :  { %583 = vmatpush.msra.mxu1 %v268_v37  ;;  %564 = vmatpush.msra.mxu0 %v235_v40  ;;  %v46_v59 = vld [vmem:[#allocation5 + $0x18] sm:$0xff]  ;;  %v529_v60 = vld [vmem:[#allocation5 + $0xf30] sm:$0xff]  ;;  %v75_v62 = vld [vmem:[#allocation5 + $0x100] sm:$0xff] }
  0x20   :  { %605 = vmatpush.msra.mxu2 %v205_v38  ;;  %625 = vmatpush.msra.mxu3 %v206_v39  ;;  %v530_v61 = vld [vmem:[#allocation5 + $0xf38] sm:$0xff]  ;;  %v76_v63 = vld [vmem:[#allocation5 + $0x108] sm:$0xff]  ;;  %v497_v0 = vld [vmem:[#allocation5 + $0xe30] sm:$0xff] }
  0x21   :  { %584 = vmatpush.msra.mxu1 %v236_v41  ;;  %565 = vmatpush.msra.mxu0 %v203_v44  ;;  %v498_v1 = vld [vmem:[#allocation5 + $0xe38] sm:$0xff]  ;;  %v43_v2 = vld [vmem:[#allocation5] sm:$0xff]  ;;  %v44_v3 = vld [vmem:[#allocation5 + $0x8] sm:$0xff] }
  0x22   :  { %606 = vmatpush.msra.mxu2 %v173_v42  ;;  %626 = vmatpush.msra.mxu3 %v174_v43  ;;  %v465_v4 = vld [vmem:[#allocation5 + $0xd30] sm:$0xff]  ;;  %v466_v5 = vld [vmem:[#allocation5 + $0xd38] sm:$0xff]  ;;  %v527_v6 = vld [vmem:[#allocation5 + $0xf20] sm:$0xff] }
  0x23   :  { %585 = vmatpush.msra.mxu1 %v204_v45  ;;  %566 = vmatpush.msra.mxu0 %v171_v48  ;;  %v528_v7 = vld [vmem:[#allocation5 + $0xf28] sm:$0xff]  ;;  %v433_v8 = vld [vmem:[#allocation5 + $0xc30] sm:$0xff]  ;;  %v434_v9 = vld [vmem:[#allocation5 + $0xc38] sm:$0xff] }
  0x24   :  { %607 = vmatpush.msra.mxu2 %v141_v46  ;;  %627 = vmatpush.msra.mxu3 %v142_v47  ;;  %v495_v10 = vld [vmem:[#allocation5 + $0xe20] sm:$0xff]  ;;  %v496_v11 = vld [vmem:[#allocation5 + $0xe28] sm:$0xff]  ;;  %v401_v12 = vld [vmem:[#allocation5 + $0xb30] sm:$0xff] }
  0x25   :  { %586 = vmatpush.msra.mxu1 %v172_v49  ;;  %567 = vmatpush.msra.mxu0 %v139_v52  ;;  %v402_v13 = vld [vmem:[#allocation5 + $0xb38] sm:$0xff]  ;;  %v463_v14 = vld [vmem:[#allocation5 + $0xd20] sm:$0xff]  ;;  %v464_v15 = vld [vmem:[#allocation5 + $0xd28] sm:$0xff] }
  0x26   :  { %608 = vmatpush.msra.mxu2 %v109_v50  ;;  %628 = vmatpush.msra.mxu3 %v110_v51  ;;  %v369_v16 = vld [vmem:[#allocation5 + $0xa30] sm:$0xff]  ;;  %v370_v17 = vld [vmem:[#allocation5 + $0xa38] sm:$0xff]  ;;  %v431_v18 = vld [vmem:[#allocation5 + $0xc20] sm:$0xff] }
  0x27   :  { %587 = vmatpush.msra.mxu1 %v140_v53  ;;  %568 = vmatpush.msra.mxu0 %v107_v56  ;;  %v432_v19 = vld [vmem:[#allocation5 + $0xc28] sm:$0xff]  ;;  %v337_v20 = vld [vmem:[#allocation5 + $0x930] sm:$0xff]  ;;  %v338_v21 = vld [vmem:[#allocation5 + $0x938] sm:$0xff] }
  0x28   :  { %609 = vmatpush.msra.mxu2 %v77_v54  ;;  %629 = vmatpush.msra.mxu3 %v78_v55  ;;  %v399_v22 = vld [vmem:[#allocation5 + $0xb20] sm:$0xff]  ;;  %v400_v23 = vld [vmem:[#allocation5 + $0xb28] sm:$0xff]  ;;  %v305_v24 = vld [vmem:[#allocation5 + $0x830] sm:$0xff] }
  0x29   :  { %588 = vmatpush.msra.mxu1 %v108_v57  ;;  %569 = vmatpush.msra.mxu0 %v75_v62  ;;  %v306_v25 = vld [vmem:[#allocation5 + $0x838] sm:$0xff]  ;;  %v367_v26 = vld [vmem:[#allocation5 + $0xa20] sm:$0xff]  ;;  %v368_v27 = vld [vmem:[#allocation5 + $0xa28] sm:$0xff] }
  0x2a   :  { %610 = vmatpush.msra.mxu2 %v45_v58  ;;  %630 = vmatpush.msra.mxu3 %v46_v59  ;;  %v273_v28 = vld [vmem:[#allocation5 + $0x730] sm:$0xff]  ;;  %v274_v29 = vld [vmem:[#allocation5 + $0x738] sm:$0xff]  ;;  %v335_v30 = vld [vmem:[#allocation5 + $0x920] sm:$0xff] }
  0x2b   :  { %589 = vmatpush.msra.mxu1 %v76_v63  ;;  %570 = vmatpush.msra.mxu0 %v43_v2  ;;  %v336_v31 = vld [vmem:[#allocation5 + $0x928] sm:$0xff]  ;;  %v241_v32 = vld [vmem:[#allocation5 + $0x630] sm:$0xff]  ;;  %v242_v33 = vld [vmem:[#allocation5 + $0x638] sm:$0xff] }
  0x2c   :  { %675 = vmatpush.msrb.mxu2 %v529_v60  ;;  %695 = vmatpush.msrb.mxu3 %v530_v61  ;;  %v303_v34 = vld [vmem:[#allocation5 + $0x820] sm:$0xff]  ;;  %v304_v35 = vld [vmem:[#allocation5 + $0x828] sm:$0xff]  ;;  %v209_v36 = vld [vmem:[#allocation5 + $0x530] sm:$0xff] }
  0x2d   :  { %590 = vmatpush.msra.mxu1 %v44_v3  ;;  %635 = vmatpush.msrb.mxu0 %v527_v6  ;;  %v210_v37 = vld [vmem:[#allocation5 + $0x538] sm:$0xff]  ;;  %v271_v38 = vld [vmem:[#allocation5 + $0x720] sm:$0xff]  ;;  %v272_v39 = vld [vmem:[#allocation5 + $0x728] sm:$0xff] }
  0x2e   :  { %676 = vmatpush.msrb.mxu2 %v497_v0  ;;  %696 = vmatpush.msrb.mxu3 %v498_v1  ;;  %v177_v40 = vld [vmem:[#allocation5 + $0x430] sm:$0xff]  ;;  %v178_v41 = vld [vmem:[#allocation5 + $0x438] sm:$0xff]  ;;  %v239_v43 = vld [vmem:[#allocation5 + $0x620] sm:$0xff] }
  0x2f   :  { %655 = vmatpush.msrb.mxu1 %v528_v7  ;;  %636 = vmatpush.msrb.mxu0 %v495_v10  ;;  %v1426_v42 = vld [vmem:[#allocation2] sm:$0x1]  ;;  %v240_v44 = vld [vmem:[#allocation5 + $0x628] sm:$0xff]  ;;  %v145_v45 = vld [vmem:[#allocation5 + $0x330] sm:$0xff] }
  0x30   :  { %677 = vmatpush.msrb.mxu2 %v465_v4  ;;  %697 = vmatpush.msrb.mxu3 %v466_v5  ;;  %v146_v46 = vld [vmem:[#allocation5 + $0x338] sm:$0xff]  ;;  %v207_v47 = vld [vmem:[#allocation5 + $0x520] sm:$0xff]  ;;  %v208_v48 = vld [vmem:[#allocation5 + $0x528] sm:$0xff] }
  0x31   :  { %656 = vmatpush.msrb.mxu1 %v496_v11  ;;  %637 = vmatpush.msrb.mxu0 %v463_v14  ;;  %v113_v49 = vld [vmem:[#allocation5 + $0x230] sm:$0xff]  ;;  %v114_v50 = vld [vmem:[#allocation5 + $0x238] sm:$0xff]  ;;  %v175_v51 = vld [vmem:[#allocation5 + $0x420] sm:$0xff] }
  0x32   :  { %678 = vmatpush.msrb.mxu2 %v433_v8  ;;  %698 = vmatpush.msrb.mxu3 %v434_v9  ;;  %v176_v52 = vld [vmem:[#allocation5 + $0x428] sm:$0xff]  ;;  %v81_v53 = vld [vmem:[#allocation5 + $0x130] sm:$0xff]  ;;  %v82_v54 = vld [vmem:[#allocation5 + $0x138] sm:$0xff] }
  0x33   :  { %657 = vmatpush.msrb.mxu1 %v464_v15  ;;  %638 = vmatpush.msrb.mxu0 %v431_v18  ;;  %v143_v55 = vld [vmem:[#allocation5 + $0x320] sm:$0xff]  ;;  %v144_v56 = vld [vmem:[#allocation5 + $0x328] sm:$0xff]  ;;  %v49_v57 = vld [vmem:[#allocation5 + $0x30] sm:$0xff] }
  0x34   :  { %679 = vmatpush.msrb.mxu2 %v401_v12  ;;  %699 = vmatpush.msrb.mxu3 %v402_v13  ;;  %v50_v58 = vld [vmem:[#allocation5 + $0x38] sm:$0xff]  ;;  %v533_v59 = vld [vmem:[#allocation5 + $0xf50] sm:$0xff]  ;;  %v111_v61 = vld [vmem:[#allocation5 + $0x220] sm:$0xff] }
  0x35   :  { %658 = vmatpush.msrb.mxu1 %v432_v19  ;;  %639 = vmatpush.msrb.mxu0 %v399_v22  ;;  %v534_v60 = vld [vmem:[#allocation5 + $0xf58] sm:$0xff]  ;;  %v112_v62 = vld [vmem:[#allocation5 + $0x228] sm:$0xff]  ;;  %v501_v63 = vld [vmem:[#allocation5 + $0xe50] sm:$0xff] }
  0x36   :  { %680 = vmatpush.msrb.mxu2 %v369_v16  ;;  %700 = vmatpush.msrb.mxu3 %v370_v17  ;;  %v502_v0 = vld [vmem:[#allocation5 + $0xe58] sm:$0xff]  ;;  %v79_v1 = vld [vmem:[#allocation5 + $0x120] sm:$0xff]  ;;  %v80_v2 = vld [vmem:[#allocation5 + $0x128] sm:$0xff] }
  0x37   :  { %659 = vmatpush.msrb.mxu1 %v400_v23  ;;  %640 = vmatpush.msrb.mxu0 %v367_v26  ;;  %v469_v3 = vld [vmem:[#allocation5 + $0xd50] sm:$0xff]  ;;  %v470_v4 = vld [vmem:[#allocation5 + $0xd58] sm:$0xff]  ;;  %v47_v5 = vld [vmem:[#allocation5 + $0x20] sm:$0xff] }
  0x38   :  { %681 = vmatpush.msrb.mxu2 %v337_v20  ;;  %701 = vmatpush.msrb.mxu3 %v338_v21  ;;  %v48_v6 = vld [vmem:[#allocation5 + $0x28] sm:$0xff]  ;;  %v531_v7 = vld [vmem:[#allocation5 + $0xf40] sm:$0xff]  ;;  %v437_v9 = vld [vmem:[#allocation5 + $0xc50] sm:$0xff] }
  0x39   :  { %660 = vmatpush.msrb.mxu1 %v368_v27  ;;  %641 = vmatpush.msrb.mxu0 %v335_v30  ;;  %v532_v8 = vld [vmem:[#allocation5 + $0xf48] sm:$0xff]  ;;  %v438_v10 = vld [vmem:[#allocation5 + $0xc58] sm:$0xff]  ;;  %v499_v11 = vld [vmem:[#allocation5 + $0xe40] sm:$0xff] }
  0x3a   :  { %682 = vmatpush.msrb.mxu2 %v305_v24  ;;  %702 = vmatpush.msrb.mxu3 %v306_v25  ;;  %v500_v12 = vld [vmem:[#allocation5 + $0xe48] sm:$0xff]  ;;  %v405_v13 = vld [vmem:[#allocation5 + $0xb50] sm:$0xff]  ;;  %v406_v14 = vld [vmem:[#allocation5 + $0xb58] sm:$0xff] }
  0x3b   :  { %661 = vmatpush.msrb.mxu1 %v336_v31  ;;  %642 = vmatpush.msrb.mxu0 %v303_v34  ;;  %v467_v15 = vld [vmem:[#allocation5 + $0xd40] sm:$0xff]  ;;  %v468_v16 = vld [vmem:[#allocation5 + $0xd48] sm:$0xff]  ;;  %v373_v17 = vld [vmem:[#allocation5 + $0xa50] sm:$0xff] }
  0x3c   :  { %683 = vmatpush.msrb.mxu2 %v273_v28  ;;  %703 = vmatpush.msrb.mxu3 %v274_v29  ;;  %v374_v18 = vld [vmem:[#allocation5 + $0xa58] sm:$0xff]  ;;  %v435_v19 = vld [vmem:[#allocation5 + $0xc40] sm:$0xff]  ;;  %v436_v20 = vld [vmem:[#allocation5 + $0xc48] sm:$0xff] }
  0x3d   :  { %662 = vmatpush.msrb.mxu1 %v304_v35  ;;  %643 = vmatpush.msrb.mxu0 %v271_v38  ;;  %v341_v21 = vld [vmem:[#allocation5 + $0x950] sm:$0xff]  ;;  %v342_v22 = vld [vmem:[#allocation5 + $0x958] sm:$0xff]  ;;  %v403_v23 = vld [vmem:[#allocation5 + $0xb40] sm:$0xff] }
  0x3e   :  { %684 = vmatpush.msrb.mxu2 %v241_v32  ;;  %704 = vmatpush.msrb.mxu3 %v242_v33  ;;  %v404_v24 = vld [vmem:[#allocation5 + $0xb48] sm:$0xff]  ;;  %v309_v25 = vld [vmem:[#allocation5 + $0x850] sm:$0xff]  ;;  %v310_v26 = vld [vmem:[#allocation5 + $0x858] sm:$0xff] }
  0x3f   :  { %663 = vmatpush.msrb.mxu1 %v272_v39  ;;  %611 = vmatmul.f32.vlgmr.msra.gmra.mxu2 %v1426_v42  ;;  %v371_v27 = vld [vmem:[#allocation5 + $0xa40] sm:$0xff]  ;;  %v372_v28 = vld [vmem:[#allocation5 + $0xa48] sm:$0xff]  ;;  %v277_v29 = vld [vmem:[#allocation5 + $0x750] sm:$0xff] }
  0x40   :  { %685 = vmatpush.msrb.mxu2 %v209_v36  ;;  %705 = vmatpush.msrb.mxu3 %v210_v37  ;;  %v278_v30 = vld [vmem:[#allocation5 + $0x758] sm:$0xff]  ;;  %v339_v31 = vld [vmem:[#allocation5 + $0x940] sm:$0xff]  ;;  %v340_v32 = vld [vmem:[#allocation5 + $0x948] sm:$0xff] }
  0x41   :  { %631 = vmatmul.f32.vlgmr.msra.gmra.mxu3 %v1426_v42  ;;  %644 = vmatpush.msrb.mxu0 %v239_v43  ;;  %v245_v33 = vld [vmem:[#allocation5 + $0x650] sm:$0xff]  ;;  %v246_v34 = vld [vmem:[#allocation5 + $0x658] sm:$0xff]  ;;  %v307_v35 = vld [vmem:[#allocation5 + $0x840] sm:$0xff] }
  0x42   :  { %686 = vmatpush.msrb.mxu2 %v177_v40  ;;  %706 = vmatpush.msrb.mxu3 %v178_v41  ;;  %v308_v36 = vld [vmem:[#allocation5 + $0x848] sm:$0xff]  ;;  %v213_v37 = vld [vmem:[#allocation5 + $0x550] sm:$0xff]  ;;  %v214_v38 = vld [vmem:[#allocation5 + $0x558] sm:$0xff] }
  0x43   :  { %664 = vmatpush.msrb.mxu1 %v240_v44  ;;  %645 = vmatpush.msrb.mxu0 %v207_v47  ;;  %v275_v39 = vld [vmem:[#allocation5 + $0x740] sm:$0xff]  ;;  %v276_v40 = vld [vmem:[#allocation5 + $0x748] sm:$0xff]  ;;  %v181_v41 = vld [vmem:[#allocation5 + $0x450] sm:$0xff] }
  0x44   :  { %687 = vmatpush.msrb.mxu2 %v145_v45  ;;  %707 = vmatpush.msrb.mxu3 %v146_v46  ;;  %v182_v43 = vld [vmem:[#allocation5 + $0x458] sm:$0xff]  ;;  %v243_v44 = vld [vmem:[#allocation5 + $0x640] sm:$0xff]  ;;  %v244_v45 = vld [vmem:[#allocation5 + $0x648] sm:$0xff] }
  0x45   :  { %665 = vmatpush.msrb.mxu1 %v208_v48  ;;  %646 = vmatpush.msrb.mxu0 %v175_v51  ;;  %v149_v46 = vld [vmem:[#allocation5 + $0x350] sm:$0xff]  ;;  %v150_v47 = vld [vmem:[#allocation5 + $0x358] sm:$0xff]  ;;  %v211_v48 = vld [vmem:[#allocation5 + $0x540] sm:$0xff] }
  0x46   :  { %688 = vmatpush.msrb.mxu2 %v113_v49  ;;  %708 = vmatpush.msrb.mxu3 %v114_v50  ;;  %v212_v49 = vld [vmem:[#allocation5 + $0x548] sm:$0xff]  ;;  %v117_v50 = vld [vmem:[#allocation5 + $0x250] sm:$0xff]  ;;  %v118_v51 = vld [vmem:[#allocation5 + $0x258] sm:$0xff] }
  0x47   :  { %666 = vmatpush.msrb.mxu1 %v176_v52  ;;  %571 = vmatmul.f32.vlgmr.msra.gmra.mxu0 %v1426_v42  ;;  %v179_v52 = vld [vmem:[#allocation5 + $0x440] sm:$0xff] }
  0x48   :  { %689 = vmatpush.msrb.mxu2 %v81_v53  ;;  %709 = vmatpush.msrb.mxu3 %v82_v54  ;;  %v180_v53 = vld [vmem:[#allocation5 + $0x448] sm:$0xff]  ;;  %v85_v54 = vld [vmem:[#allocation5 + $0x150] sm:$0xff] }
  0x49   :  { %591 = vmatmul.f32.vlgmr.msra.gmra.mxu1 %v1426_v42  ;;  %647 = vmatpush.msrb.mxu0 %v143_v55  ;;  %v86_v55 = vld [vmem:[#allocation5 + $0x158] sm:$0xff] }
  0x4a   :  { %667 = vmatpush.msrb.mxu1 %v144_v56  ;;  %690 = vmatpush.msrb.mxu2 %v49_v57  ;;  %v147_v56 = vld [vmem:[#allocation5 + $0x340] sm:$0xff]  ;;  %v148_v57 = vld [vmem:[#allocation5 + $0x348] sm:$0xff] }
  0x4b   :  { %710 = vmatpush.msrb.mxu3 %v50_v58  ;;  %691 = vmatmul.f32.vlgmr.msrb.gmra.mxu2 %v1426_v42  ;;  %v53_v58 = vld [vmem:[#allocation5 + $0x50] sm:$0xff] }
  0x4c   :  { %711 = vmatmul.f32.vlgmr.msrb.gmra.mxu3 %v1426_v42  ;;  %755 = vmatpush.msra.mxu2 %v533_v59  ;;  %v54_v59 = vld [vmem:[#allocation5 + $0x58] sm:$0xff] }
  0x4d   :  { %775 = vmatpush.msra.mxu3 %v534_v60  ;;  %648 = vmatpush.msrb.mxu0 %v111_v61  ;;  %v537_v60 = vld [vmem:[#allocation5 + $0xf70] sm:$0xff]  ;;  %v538_v61 = vld [vmem:[#allocation5 + $0xf78] sm:$0xff] }
  0x4e   :  { %668 = vmatpush.msrb.mxu1 %v112_v62  ;;  %756 = vmatpush.msra.mxu2 %v501_v63  ;;  %v115_v62 = vld [vmem:[#allocation5 + $0x240] sm:$0xff]  ;;  %v116_v63 = vld [vmem:[#allocation5 + $0x248] sm:$0xff] }
  0x4f   :  { %776 = vmatpush.msra.mxu3 %v502_v0  ;;  %649 = vmatpush.msrb.mxu0 %v79_v1  ;;  %v505_v0 = vld [vmem:[#allocation5 + $0xe70] sm:$0xff]  ;;  %v506_v1 = vld [vmem:[#allocation5 + $0xe78] sm:$0xff] }
  0x50   :  { %669 = vmatpush.msrb.mxu1 %v80_v2  ;;  %757 = vmatpush.msra.mxu2 %v469_v3  ;;  %v83_v2 = vld [vmem:[#allocation5 + $0x140] sm:$0xff]  ;;  %v84_v3 = vld [vmem:[#allocation5 + $0x148] sm:$0xff] }
  0x51   :  { %777 = vmatpush.msra.mxu3 %v470_v4  ;;  %650 = vmatpush.msrb.mxu0 %v47_v5  ;;  %v473_v4 = vld [vmem:[#allocation5 + $0xd70] sm:$0xff]  ;;  %v474_v5 = vld [vmem:[#allocation5 + $0xd78] sm:$0xff] }
  0x52   :  { %670 = vmatpush.msrb.mxu1 %v48_v6  ;;  %651 = vmatmul.f32.vlgmr.msrb.gmra.mxu0 %v1426_v42  ;;  %v51_v6 = vld [vmem:[#allocation5 + $0x40] sm:$0xff] }
  0x53   :  { %671 = vmatmul.f32.vlgmr.msrb.gmra.mxu1 %v1426_v42  ;;  %715 = vmatpush.msra.mxu0 %v531_v7  ;;  %v52_v7 = vld [vmem:[#allocation5 + $0x48] sm:$0xff] }
  0x54   :  { %735 = vmatpush.msra.mxu1 %v532_v8  ;;  %758 = vmatpush.msra.mxu2 %v437_v9  ;;  %v535_v8 = vld [vmem:[#allocation5 + $0xf60] sm:$0xff]  ;;  %v536_v9 = vld [vmem:[#allocation5 + $0xf68] sm:$0xff] }
  0x55   :  { %778 = vmatpush.msra.mxu3 %v438_v10  ;;  %716 = vmatpush.msra.mxu0 %v499_v11  ;;  %v441_v10 = vld [vmem:[#allocation5 + $0xc70] sm:$0xff]  ;;  %v442_v11 = vld [vmem:[#allocation5 + $0xc78] sm:$0xff] }
  0x56   :  { %736 = vmatpush.msra.mxu1 %v500_v12  ;;  %759 = vmatpush.msra.mxu2 %v405_v13  ;;  %v503_v12 = vld [vmem:[#allocation5 + $0xe60] sm:$0xff]  ;;  %v504_v13 = vld [vmem:[#allocation5 + $0xe68] sm:$0xff] }
  0x57   :  { %779 = vmatpush.msra.mxu3 %v406_v14  ;;  %717 = vmatpush.msra.mxu0 %v467_v15  ;;  %v409_v14 = vld [vmem:[#allocation5 + $0xb70] sm:$0xff]  ;;  %v410_v15 = vld [vmem:[#allocation5 + $0xb78] sm:$0xff] }
  0x58   :  { %737 = vmatpush.msra.mxu1 %v468_v16  ;;  %760 = vmatpush.msra.mxu2 %v373_v17  ;;  %v471_v16 = vld [vmem:[#allocation5 + $0xd60] sm:$0xff]  ;;  %v472_v17 = vld [vmem:[#allocation5 + $0xd68] sm:$0xff] }
  0x59   :  { %780 = vmatpush.msra.mxu3 %v374_v18  ;;  %718 = vmatpush.msra.mxu0 %v435_v19  ;;  %v377_v18 = vld [vmem:[#allocation5 + $0xa70] sm:$0xff]  ;;  %v378_v19 = vld [vmem:[#allocation5 + $0xa78] sm:$0xff] }
  0x5a   :  { %738 = vmatpush.msra.mxu1 %v436_v20  ;;  %761 = vmatpush.msra.mxu2 %v341_v21  ;;  %v439_v20 = vld [vmem:[#allocation5 + $0xc60] sm:$0xff]  ;;  %v440_v21 = vld [vmem:[#allocation5 + $0xc68] sm:$0xff] }
  0x5b   :  { %781 = vmatpush.msra.mxu3 %v342_v22  ;;  %719 = vmatpush.msra.mxu0 %v403_v23  ;;  %v345_v22 = vld [vmem:[#allocation5 + $0x970] sm:$0xff]  ;;  %v346_v23 = vld [vmem:[#allocation5 + $0x978] sm:$0xff] }
  0x5c   :  { %739 = vmatpush.msra.mxu1 %v404_v24  ;;  %762 = vmatpush.msra.mxu2 %v309_v25  ;;  %v407_v24 = vld [vmem:[#allocation5 + $0xb60] sm:$0xff]  ;;  %v408_v25 = vld [vmem:[#allocation5 + $0xb68] sm:$0xff] }
  0x5d   :  { %782 = vmatpush.msra.mxu3 %v310_v26  ;;  %720 = vmatpush.msra.mxu0 %v371_v27  ;;  %v313_v26 = vld [vmem:[#allocation5 + $0x870] sm:$0xff]  ;;  %v314_v27 = vld [vmem:[#allocation5 + $0x878] sm:$0xff] }
  0x5e   :  { %740 = vmatpush.msra.mxu1 %v372_v28  ;;  %763 = vmatpush.msra.mxu2 %v277_v29  ;;  %v375_v28 = vld [vmem:[#allocation5 + $0xa60] sm:$0xff]  ;;  %v376_v29 = vld [vmem:[#allocation5 + $0xa68] sm:$0xff] }
  0x5f   :  { %783 = vmatpush.msra.mxu3 %v278_v30  ;;  %721 = vmatpush.msra.mxu0 %v339_v31  ;;  %v281_v30 = vld [vmem:[#allocation5 + $0x770] sm:$0xff]  ;;  %v282_v31 = vld [vmem:[#allocation5 + $0x778] sm:$0xff] }
  0x60   :  { %741 = vmatpush.msra.mxu1 %v340_v32  ;;  %764 = vmatpush.msra.mxu2 %v245_v33  ;;  %v343_v32 = vld [vmem:[#allocation5 + $0x960] sm:$0xff]  ;;  %v344_v33 = vld [vmem:[#allocation5 + $0x968] sm:$0xff] }
  0x61   :  { %784 = vmatpush.msra.mxu3 %v246_v34  ;;  %722 = vmatpush.msra.mxu0 %v307_v35  ;;  %v249_v34 = vld [vmem:[#allocation5 + $0x670] sm:$0xff]  ;;  %v250_v35 = vld [vmem:[#allocation5 + $0x678] sm:$0xff] }
  0x62   :  { %742 = vmatpush.msra.mxu1 %v308_v36  ;;  %765 = vmatpush.msra.mxu2 %v213_v37  ;;  %v311_v36 = vld [vmem:[#allocation5 + $0x860] sm:$0xff]  ;;  %v312_v37 = vld [vmem:[#allocation5 + $0x868] sm:$0xff] }
  0x63   :  { %785 = vmatpush.msra.mxu3 %v214_v38  ;;  %723 = vmatpush.msra.mxu0 %v275_v39  ;;  %v217_v38 = vld [vmem:[#allocation5 + $0x570] sm:$0xff]  ;;  %v218_v39 = vld [vmem:[#allocation5 + $0x578] sm:$0xff] }
  0x64   :  { %743 = vmatpush.msra.mxu1 %v276_v40  ;;  %766 = vmatpush.msra.mxu2 %v181_v41  ;;  %v279_v40 = vld [vmem:[#allocation5 + $0x760] sm:$0xff]  ;;  %v280_v41 = vld [vmem:[#allocation5 + $0x768] sm:$0xff] }
  0x65   :  { %786 = vmatpush.msra.mxu3 %v182_v43  ;;  %724 = vmatpush.msra.mxu0 %v243_v44  ;;  %v185_v43 = vld [vmem:[#allocation5 + $0x470] sm:$0xff]  ;;  %v186_v44 = vld [vmem:[#allocation5 + $0x478] sm:$0xff] }
  0x66   :  { %744 = vmatpush.msra.mxu1 %v244_v45  ;;  %767 = vmatpush.msra.mxu2 %v149_v46  ;;  %v247_v45 = vld [vmem:[#allocation5 + $0x660] sm:$0xff]  ;;  %v248_v46 = vld [vmem:[#allocation5 + $0x668] sm:$0xff] }
  0x67   :  { %787 = vmatpush.msra.mxu3 %v150_v47  ;;  %725 = vmatpush.msra.mxu0 %v211_v48  ;;  %v153_v47 = vld [vmem:[#allocation5 + $0x370] sm:$0xff]  ;;  %v154_v48 = vld [vmem:[#allocation5 + $0x378] sm:$0xff] }
  0x68   :  { %745 = vmatpush.msra.mxu1 %v212_v49  ;;  %768 = vmatpush.msra.mxu2 %v117_v50  ;;  %v215_v49 = vld [vmem:[#allocation5 + $0x560] sm:$0xff]  ;;  %v216_v50 = vld [vmem:[#allocation5 + $0x568] sm:$0xff] }
  0x69   :  { %788 = vmatpush.msra.mxu3 %v118_v51  ;;  %726 = vmatpush.msra.mxu0 %v179_v52  ;;  %v121_v51 = vld [vmem:[#allocation5 + $0x270] sm:$0xff]  ;;  %v122_v52 = vld [vmem:[#allocation5 + $0x278] sm:$0xff] }
  0x6a   :  { %746 = vmatpush.msra.mxu1 %v180_v53  ;;  %769 = vmatpush.msra.mxu2 %v85_v54  ;;  %v183_v53 = vld [vmem:[#allocation5 + $0x460] sm:$0xff]  ;;  %v184_v54 = vld [vmem:[#allocation5 + $0x468] sm:$0xff] }
  0x6b   :  { %789 = vmatpush.msra.mxu3 %v86_v55  ;;  %727 = vmatpush.msra.mxu0 %v147_v56  ;;  %v89_v55 = vld [vmem:[#allocation5 + $0x170] sm:$0xff]  ;;  %v90_v56 = vld [vmem:[#allocation5 + $0x178] sm:$0xff] }
  0x6c   :  { %747 = vmatpush.msra.mxu1 %v148_v57  ;;  %770 = vmatpush.msra.mxu2 %v53_v58  ;;  %v151_v57 = vld [vmem:[#allocation5 + $0x360] sm:$0xff]  ;;  %v152_v58 = vld [vmem:[#allocation5 + $0x368] sm:$0xff] }
  0x6d   :  { %790 = vmatpush.msra.mxu3 %v54_v59  ;;  %728 = vmatpush.msra.mxu0 %v115_v62  ;;  %v57_v59 = vld [vmem:[#allocation5 + $0x70] sm:$0xff]  ;;  %v542_v62 = vld [vmem:[#allocation5 + $0xf98] sm:$0xff] }
  0x6e   :  { %835 = vmatpush.msrb.mxu2 %v537_v60  ;;  %748 = vmatpush.msra.mxu1 %v116_v63  ;;  %v58_v60 = vld [vmem:[#allocation5 + $0x78] sm:$0xff]  ;;  %v119_v63 = vld [vmem:[#allocation5 + $0x260] sm:$0xff] }
  0x6f   :  { %855 = vmatpush.msrb.mxu3 %v538_v61  ;;  %729 = vmatpush.msra.mxu0 %v83_v2  ;;  %v541_v61 = vld [vmem:[#allocation5 + $0xf90] sm:$0xff]  ;;  %v510_v2 = vld [vmem:[#allocation5 + $0xe98] sm:$0xff] }
  0x70   :  { %836 = vmatpush.msrb.mxu2 %v505_v0  ;;  %749 = vmatpush.msra.mxu1 %v84_v3  ;;  %v120_v0 = vld [vmem:[#allocation5 + $0x268] sm:$0xff]  ;;  %v87_v3 = vld [vmem:[#allocation5 + $0x160] sm:$0xff] }
  0x71   :  { %856 = vmatpush.msrb.mxu3 %v506_v1  ;;  %730 = vmatpush.msra.mxu0 %v51_v6  ;;  %v509_v1 = vld [vmem:[#allocation5 + $0xe90] sm:$0xff]  ;;  %v478_v6 = vld [vmem:[#allocation5 + $0xd98] sm:$0xff] }
  0x72   :  { %837 = vmatpush.msrb.mxu2 %v473_v4  ;;  %750 = vmatpush.msra.mxu1 %v52_v7  ;;  %v88_v4 = vld [vmem:[#allocation5 + $0x168] sm:$0xff]  ;;  %v55_v7 = vld [vmem:[#allocation5 + $0x60] sm:$0xff] }
  0x73   :  { %857 = vmatpush.msrb.mxu3 %v474_v5  ;;  %795 = vmatpush.msrb.mxu0 %v535_v8  ;;  %v477_v5 = vld [vmem:[#allocation5 + $0xd90] sm:$0xff]  ;;  %v56_v8 = vld [vmem:[#allocation5 + $0x68] sm:$0xff] }
  0x74   :  { %815 = vmatpush.msrb.mxu1 %v536_v9  ;;  %838 = vmatpush.msrb.mxu2 %v441_v10  ;;  %v539_v9 = vld [vmem:[#allocation5 + $0xf80] sm:$0xff]  ;;  %v540_v10 = vld [vmem:[#allocation5 + $0xf88] sm:$0xff] }
  0x75   :  { %858 = vmatpush.msrb.mxu3 %v442_v11  ;;  %796 = vmatpush.msrb.mxu0 %v503_v12  ;;  %v445_v11 = vld [vmem:[#allocation5 + $0xc90] sm:$0xff]  ;;  %v446_v12 = vld [vmem:[#allocation5 + $0xc98] sm:$0xff] }
  0x76   :  { %816 = vmatpush.msrb.mxu1 %v504_v13  ;;  %839 = vmatpush.msrb.mxu2 %v409_v14  ;;  %v507_v13 = vld [vmem:[#allocation5 + $0xe80] sm:$0xff]  ;;  %v508_v14 = vld [vmem:[#allocation5 + $0xe88] sm:$0xff] }
  0x77   :  { %859 = vmatpush.msrb.mxu3 %v410_v15  ;;  %797 = vmatpush.msrb.mxu0 %v471_v16  ;;  %v413_v15 = vld [vmem:[#allocation5 + $0xb90] sm:$0xff]  ;;  %v414_v16 = vld [vmem:[#allocation5 + $0xb98] sm:$0xff] }
  0x78   :  { %817 = vmatpush.msrb.mxu1 %v472_v17  ;;  %840 = vmatpush.msrb.mxu2 %v377_v18  ;;  %v475_v17 = vld [vmem:[#allocation5 + $0xd80] sm:$0xff]  ;;  %v476_v18 = vld [vmem:[#allocation5 + $0xd88] sm:$0xff] }
  0x79   :  { %860 = vmatpush.msrb.mxu3 %v378_v19  ;;  %798 = vmatpush.msrb.mxu0 %v439_v20  ;;  %v381_v19 = vld [vmem:[#allocation5 + $0xa90] sm:$0xff]  ;;  %v382_v20 = vld [vmem:[#allocation5 + $0xa98] sm:$0xff] }
  0x7a   :  { %818 = vmatpush.msrb.mxu1 %v440_v21  ;;  %841 = vmatpush.msrb.mxu2 %v345_v22  ;;  %v443_v21 = vld [vmem:[#allocation5 + $0xc80] sm:$0xff]  ;;  %v444_v22 = vld [vmem:[#allocation5 + $0xc88] sm:$0xff] }
  0x7b   :  { %861 = vmatpush.msrb.mxu3 %v346_v23  ;;  %799 = vmatpush.msrb.mxu0 %v407_v24  ;;  %v350_v23 = vld [vmem:[#allocation5 + $0x998] sm:$0xff]  ;;  %v411_v24 = vld [vmem:[#allocation5 + $0xb80] sm:$0xff] }
  0x7c   :  { %819 = vmatpush.msrb.mxu1 %v408_v25  ;;  %842 = vmatpush.msrb.mxu2 %v313_v26  ;;  %v412_v25 = vld [vmem:[#allocation5 + $0xb88] sm:$0xff]  ;;  %v317_v26 = vld [vmem:[#allocation5 + $0x890] sm:$0xff] }
  0x7d   :  { %862 = vmatpush.msrb.mxu3 %v314_v27  ;;  %800 = vmatpush.msrb.mxu0 %v375_v28  ;;  %v318_v27 = vld [vmem:[#allocation5 + $0x898] sm:$0xff]  ;;  %v379_v28 = vld [vmem:[#allocation5 + $0xa80] sm:$0xff] }
  0x7e   :  { %820 = vmatpush.msrb.mxu1 %v376_v29  ;;  %843 = vmatpush.msrb.mxu2 %v281_v30  ;;  %v380_v29 = vld [vmem:[#allocation5 + $0xa88] sm:$0xff]  ;;  %v285_v30 = vld [vmem:[#allocation5 + $0x790] sm:$0xff] }
  0x7f   :  { %863 = vmatpush.msrb.mxu3 %v282_v31  ;;  %801 = vmatpush.msrb.mxu0 %v343_v32  ;;  %v286_v31 = vld [vmem:[#allocation5 + $0x798] sm:$0xff]  ;;  %v347_v32 = vld [vmem:[#allocation5 + $0x980] sm:$0xff] }
  0x80   :  { %821 = vmatpush.msrb.mxu1 %v344_v33  ;;  %844 = vmatpush.msrb.mxu2 %v249_v34  ;;  %v348_v33 = vld [vmem:[#allocation5 + $0x988] sm:$0xff]  ;;  %v253_v34 = vld [vmem:[#allocation5 + $0x690] sm:$0xff] }
  0x81   :  { %864 = vmatpush.msrb.mxu3 %v250_v35  ;;  %802 = vmatpush.msrb.mxu0 %v311_v36  ;;  %v254_v35 = vld [vmem:[#allocation5 + $0x698] sm:$0xff]  ;;  %v315_v36 = vld [vmem:[#allocation5 + $0x880] sm:$0xff] }
  0x82   :  { %822 = vmatpush.msrb.mxu1 %v312_v37  ;;  %845 = vmatpush.msrb.mxu2 %v217_v38  ;;  %v316_v37 = vld [vmem:[#allocation5 + $0x888] sm:$0xff]  ;;  %v221_v38 = vld [vmem:[#allocation5 + $0x590] sm:$0xff] }
  0x83   :  { %865 = vmatpush.msrb.mxu3 %v218_v39  ;;  %803 = vmatpush.msrb.mxu0 %v279_v40  ;;  %v222_v39 = vld [vmem:[#allocation5 + $0x598] sm:$0xff]  ;;  %v283_v40 = vld [vmem:[#allocation5 + $0x780] sm:$0xff] }
  0x84   :  { %823 = vmatpush.msrb.mxu1 %v280_v41  ;;  %846 = vmatpush.msrb.mxu2 %v185_v43  ;;  %v284_v41 = vld [vmem:[#allocation5 + $0x788] sm:$0xff]  ;;  %v189_v43 = vld [vmem:[#allocation5 + $0x490] sm:$0xff] }
  0x85   :  { %866 = vmatpush.msrb.mxu3 %v186_v44  ;;  %771 = vmatmul.f32.vlgmr.msra.gmra.mxu2 %v1426_v42  ;;  %v190_v44 = vld [vmem:[#allocation5 + $0x498] sm:$0xff] }
  0x86   :  { %791 = vmatmul.f32.vlgmr.msra.gmra.mxu3 %v1426_v42  ;;  %804 = vmatpush.msrb.mxu0 %v247_v45  ;;  %v251_v45 = vld [vmem:[#allocation5 + $0x680] sm:$0xff] }
  0x87   :  { %824 = vmatpush.msrb.mxu1 %v248_v46  ;;  %847 = vmatpush.msrb.mxu2 %v153_v47  ;;  %v252_v46 = vld [vmem:[#allocation5 + $0x688] sm:$0xff]  ;;  %v157_v47 = vld [vmem:[#allocation5 + $0x390] sm:$0xff] }
  0x88   :  { %867 = vmatpush.msrb.mxu3 %v154_v48  ;;  %805 = vmatpush.msrb.mxu0 %v215_v49  ;;  %v158_v48 = vld [vmem:[#allocation5 + $0x398] sm:$0xff]  ;;  %v219_v49 = vld [vmem:[#allocation5 + $0x580] sm:$0xff] }
  0x89   :  { %825 = vmatpush.msrb.mxu1 %v216_v50  ;;  %848 = vmatpush.msrb.mxu2 %v121_v51  ;;  %v220_v50 = vld [vmem:[#allocation5 + $0x588] sm:$0xff]  ;;  %v125_v51 = vld [vmem:[#allocation5 + $0x290] sm:$0xff] }
  0x8a   :  { %868 = vmatpush.msrb.mxu3 %v122_v52  ;;  %806 = vmatpush.msrb.mxu0 %v183_v53  ;;  %v126_v52 = vld [vmem:[#allocation5 + $0x298] sm:$0xff]  ;;  %v187_v53 = vld [vmem:[#allocation5 + $0x480] sm:$0xff] }
  0x8b   :  { %826 = vmatpush.msrb.mxu1 %v184_v54  ;;  %849 = vmatpush.msrb.mxu2 %v89_v55  ;;  %v188_v54 = vld [vmem:[#allocation5 + $0x488] sm:$0xff]  ;;  %v93_v55 = vld [vmem:[#allocation5 + $0x190] sm:$0xff] }
  0x8c   :  { %869 = vmatpush.msrb.mxu3 %v90_v56  ;;  %731 = vmatmul.f32.vlgmr.msra.gmra.mxu0 %v1426_v42  ;;  %v94_v56 = vld [vmem:[#allocation5 + $0x198] sm:$0xff] }
  0x8d   :  { %751 = vmatmul.f32.vlgmr.msra.gmra.mxu1 %v1426_v42  ;;  %807 = vmatpush.msrb.mxu0 %v151_v57  ;;  %v155_v57 = vld [vmem:[#allocation5 + $0x380] sm:$0xff] }
  0x8e   :  { %827 = vmatpush.msrb.mxu1 %v152_v58  ;;  %850 = vmatpush.msrb.mxu2 %v57_v59  ;;  %v156_v58 = vld [vmem:[#allocation5 + $0x388] sm:$0xff]  ;;  %v61_v59 = vld [vmem:[#allocation5 + $0x90] sm:$0xff] }
  0x8f   :  { %870 = vmatpush.msrb.mxu3 %v58_v60  ;;  %851 = vmatmul.f32.vlgmr.msrb.gmra.mxu2 %v1426_v42  ;;  %v62_v60 = vld [vmem:[#allocation5 + $0x98] sm:$0xff] }
  0x90   :  { %871 = vmatmul.f32.vlgmr.msrb.gmra.mxu3 %v1426_v42  ;;  %915 = vmatpush.msra.mxu2 %v541_v61  ;;  %v545_v61 = vld [vmem:[#allocation5 + $0xfb0] sm:$0xff] }
  0x91   :  { %935 = vmatpush.msra.mxu3 %v542_v62  ;;  %808 = vmatpush.msrb.mxu0 %v119_v63  ;;  %v546_v62 = vld [vmem:[#allocation5 + $0xfb8] sm:$0xff]  ;;  %v123_v63 = vld [vmem:[#allocation5 + $0x280] sm:$0xff] }
  0x92   :  { %828 = vmatpush.msrb.mxu1 %v120_v0  ;;  %916 = vmatpush.msra.mxu2 %v509_v1  ;;  %v124_v0 = vld [vmem:[#allocation5 + $0x288] sm:$0xff]  ;;  %v513_v1 = vld [vmem:[#allocation5 + $0xeb0] sm:$0xff] }
  0x93   :  { %936 = vmatpush.msra.mxu3 %v510_v2  ;;  %809 = vmatpush.msrb.mxu0 %v87_v3  ;;  %v514_v2 = vld [vmem:[#allocation5 + $0xeb8] sm:$0xff]  ;;  %v91_v3 = vld [vmem:[#allocation5 + $0x180] sm:$0xff] }
  0x94   :  { %829 = vmatpush.msrb.mxu1 %v88_v4  ;;  %917 = vmatpush.msra.mxu2 %v477_v5  ;;  %v92_v4 = vld [vmem:[#allocation5 + $0x188] sm:$0xff]  ;;  %v481_v5 = vld [vmem:[#allocation5 + $0xdb0] sm:$0xff] }
  0x95   :  { %937 = vmatpush.msra.mxu3 %v478_v6  ;;  %810 = vmatpush.msrb.mxu0 %v55_v7  ;;  %v482_v6 = vld [vmem:[#allocation5 + $0xdb8] sm:$0xff]  ;;  %v59_v7 = vld [vmem:[#allocation5 + $0x80] sm:$0xff] }
  0x96   :  { %830 = vmatpush.msrb.mxu1 %v56_v8  ;;  %811 = vmatmul.f32.vlgmr.msrb.gmra.mxu0 %v1426_v42  ;;  %v60_v8 = vld [vmem:[#allocation5 + $0x88] sm:$0xff] }
  0x97   :  { %831 = vmatmul.f32.vlgmr.msrb.gmra.mxu1 %v1426_v42  ;;  %875 = vmatpush.msra.mxu0 %v539_v9  ;;  %v349_v42 = vld [vmem:[#allocation5 + $0x990] sm:$0xff]  ;;  %v543_v9 = vld [vmem:[#allocation5 + $0xfa0] sm:$0xff] }
  0x98   :  { %895 = vmatpush.msra.mxu1 %v540_v10  ;;  %918 = vmatpush.msra.mxu2 %v445_v11  ;;  %v544_v10 = vld [vmem:[#allocation5 + $0xfa8] sm:$0xff]  ;;  %v449_v11 = vld [vmem:[#allocation5 + $0xcb0] sm:$0xff] }
  0x99   :  { %938 = vmatpush.msra.mxu3 %v446_v12  ;;  %876 = vmatpush.msra.mxu0 %v507_v13  ;;  %v450_v12 = vld [vmem:[#allocation5 + $0xcb8] sm:$0xff]  ;;  %v511_v13 = vld [vmem:[#allocation5 + $0xea0] sm:$0xff] }
  0x9a   :  { %896 = vmatpush.msra.mxu1 %v508_v14  ;;  %919 = vmatpush.msra.mxu2 %v413_v15  ;;  %v512_v14 = vld [vmem:[#allocation5 + $0xea8] sm:$0xff]  ;;  %v417_v15 = vld [vmem:[#allocation5 + $0xbb0] sm:$0xff] }
  0x9b   :  { %939 = vmatpush.msra.mxu3 %v414_v16  ;;  %877 = vmatpush.msra.mxu0 %v475_v17  ;;  %v418_v16 = vld [vmem:[#allocation5 + $0xbb8] sm:$0xff]  ;;  %v479_v17 = vld [vmem:[#allocation5 + $0xda0] sm:$0xff] }
  0x9c   :  { %897 = vmatpush.msra.mxu1 %v476_v18  ;;  %920 = vmatpush.msra.mxu2 %v381_v19  ;;  %v480_v18 = vld [vmem:[#allocation5 + $0xda8] sm:$0xff]  ;;  %v385_v19 = vld [vmem:[#allocation5 + $0xab0] sm:$0xff] }
  0x9d   :  { %940 = vmatpush.msra.mxu3 %v382_v20  ;;  %878 = vmatpush.msra.mxu0 %v443_v21  ;;  %v386_v20 = vld [vmem:[#allocation5 + $0xab8] sm:$0xff]  ;;  %v447_v21 = vld [vmem:[#allocation5 + $0xca0] sm:$0xff] }
  0x9e   :  { %898 = vmatpush.msra.mxu1 %v444_v22  ;;  %921 = vmatpush.msra.mxu2 %v349_v42  ;;  %v448_v22 = vld [vmem:[#allocation5 + $0xca8] sm:$0xff]  ;;  %v353_v42 = vld [vmem:[#allocation5 + $0x9b0] sm:$0xff] }
  0x9f   :  { %941 = vmatpush.msra.mxu3 %v350_v23  ;;  %879 = vmatpush.msra.mxu0 %v411_v24  ;;  %v354_v23 = vld [vmem:[#allocation5 + $0x9b8] sm:$0xff]  ;;  %v415_v24 = vld [vmem:[#allocation5 + $0xba0] sm:$0xff] }
  0xa0   :  { %899 = vmatpush.msra.mxu1 %v412_v25  ;;  %922 = vmatpush.msra.mxu2 %v317_v26  ;;  %v416_v25 = vld [vmem:[#allocation5 + $0xba8] sm:$0xff]  ;;  %v321_v26 = vld [vmem:[#allocation5 + $0x8b0] sm:$0xff] }
  0xa1   :  { %942 = vmatpush.msra.mxu3 %v318_v27  ;;  %880 = vmatpush.msra.mxu0 %v379_v28  ;;  %v322_v27 = vld [vmem:[#allocation5 + $0x8b8] sm:$0xff]  ;;  %v383_v28 = vld [vmem:[#allocation5 + $0xaa0] sm:$0xff] }
  0xa2   :  { %900 = vmatpush.msra.mxu1 %v380_v29  ;;  %923 = vmatpush.msra.mxu2 %v285_v30  ;;  %v384_v29 = vld [vmem:[#allocation5 + $0xaa8] sm:$0xff]  ;;  %v289_v30 = vld [vmem:[#allocation5 + $0x7b0] sm:$0xff] }
  0xa3   :  { %943 = vmatpush.msra.mxu3 %v286_v31  ;;  %881 = vmatpush.msra.mxu0 %v347_v32  ;;  %v290_v31 = vld [vmem:[#allocation5 + $0x7b8] sm:$0xff]  ;;  %v351_v32 = vld [vmem:[#allocation5 + $0x9a0] sm:$0xff] }
  0xa4   :  { %901 = vmatpush.msra.mxu1 %v348_v33  ;;  %924 = vmatpush.msra.mxu2 %v253_v34  ;;  %v352_v33 = vld [vmem:[#allocation5 + $0x9a8] sm:$0xff]  ;;  %v257_v34 = vld [vmem:[#allocation5 + $0x6b0] sm:$0xff] }
  0xa5   :  { %944 = vmatpush.msra.mxu3 %v254_v35  ;;  %882 = vmatpush.msra.mxu0 %v315_v36  ;;  %v258_v35 = vld [vmem:[#allocation5 + $0x6b8] sm:$0xff]  ;;  %v319_v36 = vld [vmem:[#allocation5 + $0x8a0] sm:$0xff] }
  0xa6   :  { %902 = vmatpush.msra.mxu1 %v316_v37  ;;  %925 = vmatpush.msra.mxu2 %v221_v38  ;;  %v320_v37 = vld [vmem:[#allocation5 + $0x8a8] sm:$0xff]  ;;  %v225_v38 = vld [vmem:[#allocation5 + $0x5b0] sm:$0xff] }
  0xa7   :  { %945 = vmatpush.msra.mxu3 %v222_v39  ;;  %883 = vmatpush.msra.mxu0 %v283_v40  ;;  %v226_v39 = vld [vmem:[#allocation5 + $0x5b8] sm:$0xff]  ;;  %v287_v40 = vld [vmem:[#allocation5 + $0x7a0] sm:$0xff] }
  0xa8   :  { %903 = vmatpush.msra.mxu1 %v284_v41  ;;  %926 = vmatpush.msra.mxu2 %v189_v43  ;;  %v288_v41 = vld [vmem:[#allocation5 + $0x7a8] sm:$0xff] }
  0xa9   :  { %946 = vmatpush.msra.mxu3 %v190_v44  ;;  %884 = vmatpush.msra.mxu0 %v251_v45  ;;  %v193_v45 = vld [vmem:[#allocation5 + $0x4b0] sm:$0xff] }
  0xaa   :  { %904 = vmatpush.msra.mxu1 %v252_v46  ;;  %927 = vmatpush.msra.mxu2 %v157_v47  ;;  %v194_v46 = vld [vmem:[#allocation5 + $0x4b8] sm:$0xff] }
  0xab   :  { %947 = vmatpush.msra.mxu3 %v158_v48  ;;  %885 = vmatpush.msra.mxu0 %v219_v49  ;;  %v255_v49 = vld [vmem:[#allocation5 + $0x6a0] sm:$0xff] }
  0xac   :  { %905 = vmatpush.msra.mxu1 %v220_v50  ;;  %928 = vmatpush.msra.mxu2 %v125_v51  ;;  %v256_v50 = vld [vmem:[#allocation5 + $0x6a8] sm:$0xff]  ;;  %v161_v51 = vld [vmem:[#allocation5 + $0x3b0] sm:$0xff] }
  0xad   :  { %948 = vmatpush.msra.mxu3 %v126_v52  ;;  %886 = vmatpush.msra.mxu0 %v187_v53  ;;  %v162_v52 = vld [vmem:[#allocation5 + $0x3b8] sm:$0xff] }
  0xae   :  { %906 = vmatpush.msra.mxu1 %v188_v54  ;;  %929 = vmatpush.msra.mxu2 %v93_v55  ;;  %v1448_v53 = vld [vmem:[#allocation2] sm:$0x1]  ;;  %v223_v54 = vld [vmem:[#allocation5 + $0x5a0] sm:$0xff]  ;;  %v224_v55 = vld [vmem:[#allocation5 + $0x5a8] sm:$0xff] }
  0xaf   :  { %949 = vmatpush.msra.mxu3 %v94_v56  ;;  %887 = vmatpush.msra.mxu0 %v155_v57  ;;  %v129_v56 = vld [vmem:[#allocation5 + $0x2b0] sm:$0xff]  ;;  %v130_v57 = vld [vmem:[#allocation5 + $0x2b8] sm:$0xff] }
  0xb0   :  { %907 = vmatpush.msra.mxu1 %v156_v58  ;;  %930 = vmatpush.msra.mxu2 %v61_v59  ;;  %v191_v58 = vld [vmem:[#allocation5 + $0x4a0] sm:$0xff]  ;;  %v192_v59 = vld [vmem:[#allocation5 + $0x4a8] sm:$0xff] }
  0xb1   :  { %950 = vmatpush.msra.mxu3 %v62_v60  ;;  %888 = vmatpush.msra.mxu0 %v123_v63  ;;  %v97_v60 = vld [vmem:[#allocation5 + $0x1b0] sm:$0xff] }
  0xb2   :  { %995 = vmatpush.msrb.mxu2 %v545_v61  ;;  %908 = vmatpush.msra.mxu1 %v124_v0  ;;  %v98_v61 = vld [vmem:[#allocation5 + $0x1b8] sm:$0xff] }
  0xb3   :  { %1015 = vmatpush.msrb.mxu3 %v546_v62  ;;  %889 = vmatpush.msra.mxu0 %v91_v3 }
  0xb4   :  { %996 = vmatpush.msrb.mxu2 %v513_v1  ;;  %909 = vmatpush.msra.mxu1 %v92_v4  ;;  %v159_v1 = vld [vmem:[#allocation5 + $0x3a0] sm:$0xff] }
  0xb5   :  { %1016 = vmatpush.msrb.mxu3 %v514_v2  ;;  %890 = vmatpush.msra.mxu0 %v59_v7  ;;  %v160_v2 = vld [vmem:[#allocation5 + $0x3a8] sm:$0xff] }
  0xb6   :  { %997 = vmatpush.msrb.mxu2 %v481_v5  ;;  %910 = vmatpush.msra.mxu1 %v60_v8  ;;  %v65_v5 = vld [vmem:[#allocation5 + $0xb0] sm:$0xff] }
  0xb7   :  { %1017 = vmatpush.msrb.mxu3 %v482_v6  ;;  %955 = vmatpush.msrb.mxu0 %v543_v9  ;;  %v66_v6 = vld [vmem:[#allocation5 + $0xb8] sm:$0xff] }
  0xb8   :  { %975 = vmatpush.msrb.mxu1 %v544_v10  ;;  %998 = vmatpush.msrb.mxu2 %v449_v11 }
  0xb9   :  { %1018 = vmatpush.msrb.mxu3 %v450_v12  ;;  %956 = vmatpush.msrb.mxu0 %v511_v13 }
  0xba   :  { %976 = vmatpush.msrb.mxu1 %v512_v14  ;;  %999 = vmatpush.msrb.mxu2 %v417_v15  ;;  %v549_v15 = vld [vmem:[#allocation5 + $0xfd0] sm:$0xff] }
  0xbb   :  { %1019 = vmatpush.msrb.mxu3 %v418_v16  ;;  %957 = vmatpush.msrb.mxu0 %v479_v17  ;;  %v550_v16 = vld [vmem:[#allocation5 + $0xfd8] sm:$0xff] }
  0xbc   :  { %977 = vmatpush.msrb.mxu1 %v480_v18  ;;  %1000 = vmatpush.msrb.mxu2 %v385_v19  ;;  %v127_v18 = vld [vmem:[#allocation5 + $0x2a0] sm:$0xff]  ;;  %v128_v19 = vld [vmem:[#allocation5 + $0x2a8] sm:$0xff] }
  0xbd   :  { %1020 = vmatpush.msrb.mxu3 %v386_v20  ;;  %958 = vmatpush.msrb.mxu0 %v447_v21 }
  0xbe   :  { %978 = vmatpush.msrb.mxu1 %v448_v22  ;;  %1001 = vmatpush.msrb.mxu2 %v353_v42  ;;  %v517_v22 = vld [vmem:[#allocation5 + $0xed0] sm:$0xff]  ;;  %v518_v42 = vld [vmem:[#allocation5 + $0xed8] sm:$0xff] }
  0xbf   :  { %1021 = vmatpush.msrb.mxu3 %v354_v23  ;;  %959 = vmatpush.msrb.mxu0 %v415_v24  ;;  %v95_v24 = vld [vmem:[#allocation5 + $0x1a0] sm:$0xff] }
  0xc0   :  { %979 = vmatpush.msrb.mxu1 %v416_v25  ;;  %1002 = vmatpush.msrb.mxu2 %v321_v26  ;;  %v96_v25 = vld [vmem:[#allocation5 + $0x1a8] sm:$0xff] }
  0xc1   :  { %1022 = vmatpush.msrb.mxu3 %v322_v27  ;;  %960 = vmatpush.msrb.mxu0 %v383_v28  ;;  %v485_v27 = vld [vmem:[#allocation5 + $0xdd0] sm:$0xff]  ;;  %v486_v28 = vld [vmem:[#allocation5 + $0xdd8] sm:$0xff] }
  0xc2   :  { %980 = vmatpush.msrb.mxu1 %v384_v29  ;;  %1003 = vmatpush.msrb.mxu2 %v289_v30  ;;  %v1444_v43 = vpop.f32.mrf.mxu2  ;;  %v63_v29 = vld [vmem:[#allocation5 + $0xa0] sm:$0xff]  ;;  %v64_v30 = vld [vmem:[#allocation5 + $0xa8] sm:$0xff] }
  0xc3   :  { %1023 = vmatpush.msrb.mxu3 %v290_v31  ;;  %961 = vmatpush.msrb.mxu0 %v351_v32  ;;  %v1228_v63 = vrot.slane %v1444_v43, 6  ;;  %v547_v31 = vld [vmem:[#allocation5 + $0xfc0] sm:$0xff]  ;;  %v548_v32 = vld [vmem:[#allocation5 + $0xfc8] sm:$0xff]  ;;  %v390_v43 = vld [vmem:[#allocation5 + $0xad8] sm:$0xff] }
  0xc4   :  { %981 = vmatpush.msrb.mxu1 %v352_v33  ;;  %1004 = vmatpush.msrb.mxu2 %v257_v34  ;;  %v1446_v44 = vpop.f32.mrf.mxu3  ;;  %v572_v47 = vpop.f32.mrf.mxu0  ;;  %v453_v33 = vld [vmem:[#allocation5 + $0xcd0] sm:$0xff]  ;;  %v454_v34 = vld [vmem:[#allocation5 + $0xcd8] sm:$0xff] }
  0xc5   :  { %1024 = vmatpush.msrb.mxu3 %v258_v35  ;;  %962 = vmatpush.msrb.mxu0 %v319_v36  ;;  %v1229_v0 = vrot.slane %v1446_v44, 5  ;;  %v515_v35 = vld [vmem:[#allocation5 + $0xec0] sm:$0xff]  ;;  %v516_v36 = vld [vmem:[#allocation5 + $0xec8] sm:$0xff] }
  0xc6   :  { %982 = vmatpush.msrb.mxu1 %v320_v37  ;;  %v592_v48 = vpop.f32.mrf.mxu1  ;;  %1005 = vmatpush.msrb.mxu2 %v225_v38  ;;  %v421_v37 = vld [vmem:[#allocation5 + $0xbd0] sm:$0xff]  ;;  %v422_v38 = vld [vmem:[#allocation5 + $0xbd8] sm:$0xff]  ;;  %v451_v44 = vld [vmem:[#allocation5 + $0xcc0] sm:$0xff] }
  0xc7   :  { %1025 = vmatpush.msrb.mxu3 %v226_v39  ;;  %963 = vmatpush.msrb.mxu0 %v287_v40  ;;  %v1227_v62 = vrot.slane %v592_v48, 7  ;;  %v1258_v12 = vsel %vm1257_vm1, %v1228_v63, %v1229_v0  ;;  %v483_v39 = vld [vmem:[#allocation5 + $0xdc0] sm:$0xff]  ;;  %v484_v40 = vld [vmem:[#allocation5 + $0xdc8] sm:$0xff]  ;;  %v229_v63 = vld [vmem:[#allocation5 + $0x5d0] sm:$0xff] }
  0xc8   :  { %983 = vmatpush.msrb.mxu1 %v288_v41  ;;  %1006 = vmatpush.msrb.mxu2 %v193_v45  ;;  %v389_v41 = vld [vmem:[#allocation5 + $0xad0] sm:$0xff]  ;;  %v452_v45 = vld [vmem:[#allocation5 + $0xcc8] sm:$0xff]  ;;  %v419_v48 = vld [vmem:[#allocation5 + $0xbc0] sm:$0xff] }
  0xc9   :  { %1026 = vmatpush.msrb.mxu3 %v194_v46  ;;  %931 = vmatmul.f32.vlgmr.msra.gmra.mxu2 %v1448_v53  ;;  %v1256_v11 = vsel %vm1255_vm0, %v572_v47, %v1227_v62  ;;  %v357_v46 = vld [vmem:[#allocation5 + $0x9d0] sm:$0xff]  ;;  %v358_v47 = vld [vmem:[#allocation5 + $0x9d8] sm:$0xff]  ;;  %v324_v62 = vld [vmem:[#allocation5 + $0x8c8] sm:$0xff] }
  0xca   :  { %951 = vmatmul.f32.vlgmr.msra.gmra.mxu3 %v1448_v53  ;;  %964 = vmatpush.msrb.mxu0 %v255_v49  ;;  %v1260_v21 = vsel %vm1259_vm2, %v1256_v11, %v1258_v12  ;;  %v420_v49 = vld [vmem:[#allocation5 + $0xbc8] sm:$0xff]  ;;  %v230_v0 = vld [vmem:[#allocation5 + $0x5d8] sm:$0xff]  ;;  %v133_v11 = vld [vmem:[#allocation5 + $0x2d0] sm:$0xff] }
  0xcb   :  { %984 = vmatpush.msrb.mxu1 %v256_v50  ;;  %1007 = vmatpush.msrb.mxu2 %v161_v51  ;;  %v325_v50 = vld [vmem:[#allocation5 + $0x8d0] sm:$0xff]  ;;  %v326_v51 = vld [vmem:[#allocation5 + $0x8d8] sm:$0xff] }
  0xcc   :  { %1027 = vmatpush.msrb.mxu3 %v162_v52  ;;  %965 = vmatpush.msrb.mxu0 %v223_v54  ;;  %v387_v52 = vld [vmem:[#allocation5 + $0xac0] sm:$0xff]  ;;  %v388_v54 = vld [vmem:[#allocation5 + $0xac8] sm:$0xff]  ;;  %v134_v12 = vld [vmem:[#allocation5 + $0x2d8] sm:$0xff] }
  0xcd   :  { %985 = vmatpush.msrb.mxu1 %v224_v55  ;;  %1008 = vmatpush.msrb.mxu2 %v129_v56  ;;  %v293_v55 = vld [vmem:[#allocation5 + $0x7d0] sm:$0xff]  ;;  %v294_v56 = vld [vmem:[#allocation5 + $0x7d8] sm:$0xff] }
  0xce   :  { %1028 = vmatpush.msrb.mxu3 %v130_v57  ;;  %966 = vmatpush.msrb.mxu0 %v191_v58  ;;  %v692_v3 = vpop.f32.mrf.mxu2  ;;  %v355_v57 = vld [vmem:[#allocation5 + $0x9c0] sm:$0xff]  ;;  %v356_v58 = vld [vmem:[#allocation5 + $0x9c8] sm:$0xff] }
  0xcf   :  { %986 = vmatpush.msrb.mxu1 %v192_v59  ;;  %v712_v4 = vpop.f32.mrf.mxu3  ;;  %1009 = vmatpush.msrb.mxu2 %v97_v60  ;;  %v652_v7 = vpop.f32.mrf.mxu0  ;;  %v1232_v9 = vrot.slane %v692_v3, 2  ;;  %v261_v59 = vld [vmem:[#allocation5 + $0x6d0] sm:$0xff]  ;;  %v262_v60 = vld [vmem:[#allocation5 + $0x6d8] sm:$0xff] }
  0xd0   :  { %1029 = vmatpush.msrb.mxu3 %v98_v61  ;;  %v672_v8 = vpop.f32.mrf.mxu1  ;;  %v1233_v10 = vrot.slane %v712_v4, 1  ;;  %891 = vmatmul.f32.vlgmr.msra.gmra.mxu0 %v1448_v53  ;;  %v1230_v13 = vrot.slane %v652_v7, 4  ;;  %v323_v61 = vld [vmem:[#allocation5 + $0x8c0] sm:$0xff]  ;;  %v197_v3 = vld [vmem:[#allocation5 + $0x4d0] sm:$0xff]  ;;  %v198_v4 = vld [vmem:[#allocation5 + $0x4d8] sm:$0xff] }
  0xd1   :  { %911 = vmatmul.f32.vlgmr.msra.gmra.mxu1 %v1448_v53  ;;  %v1231_v14 = vrot.slane %v672_v8, 3  ;;  %967 = vmatpush.msrb.mxu0 %v159_v1  ;;  %v291_v1 = vld [vmem:[#allocation5 + $0x7c0] sm:$0xff]  ;;  %v165_v7 = vld [vmem:[#allocation5 + $0x3d0] sm:$0xff]  ;;  %v166_v8 = vld [vmem:[#allocation5 + $0x3d8] sm:$0xff] }
  0xd2   :  { %987 = vmatpush.msrb.mxu1 %v160_v2  ;;  %v1264_v17 = vsel %vm1263_vm3, %v1232_v9, %v1233_v10  ;;  %1010 = vmatpush.msrb.mxu2 %v65_v5  ;;  %v292_v2 = vld [vmem:[#allocation5 + $0x7c8] sm:$0xff]  ;;  %v259_v5 = vld [vmem:[#allocation5 + $0x6c0] sm:$0xff] }
  0xd3   :  { %1030 = vmatpush.msrb.mxu3 %v66_v6  ;;  %v1262_v20 = vsel %vm1261_vm4, %v1230_v13, %v1231_v14  ;;  %1011 = vmatmul.f32.vlgmr.msrb.gmra.mxu2 %v1448_v53  ;;  %v260_v6 = vld [vmem:[#allocation5 + $0x6c8] sm:$0xff]  ;;  %v227_v9 = vld [vmem:[#allocation5 + $0x5c0] sm:$0xff] }
  0xd4   :  { %1031 = vmatmul.f32.vlgmr.msrb.gmra.mxu3 %v1448_v53  ;;  %v1266_v23 = vsel %vm1265_vm5, %v1262_v20, %v1264_v17  ;;  %1075 = vmatpush.msra.mxu2 %v549_v15  ;;  %v228_v10 = vld [vmem:[#allocation5 + $0x5c8] sm:$0xff]  ;;  %v195_v13 = vld [vmem:[#allocation5 + $0x4c0] sm:$0xff]  ;;  %v101_v15 = vld [vmem:[#allocation5 + $0x1d0] sm:$0xff] }
  0xd5   :  { %1095 = vmatpush.msra.mxu3 %v550_v16  ;;  %v1268_v26 = vsel %vm1267_vm6, %v1260_v21, %v1266_v23  ;;  %968 = vmatpush.msrb.mxu0 %v127_v18  ;;  %v196_v14 = vld [vmem:[#allocation5 + $0x4c8] sm:$0xff]  ;;  %v102_v16 = vld [vmem:[#allocation5 + $0x1d8] sm:$0xff]  ;;  %v163_v17 = vld [vmem:[#allocation5 + $0x3c0] sm:$0xff] }
  0xd6   :  { %988 = vmatpush.msrb.mxu1 %v128_v19  ;;  %1294 = vst [vmem:[#allocation7] sm:$0xff] %v1268_v26  ;;  %1076 = vmatpush.msra.mxu2 %v517_v22  ;;  %v164_v18 = vld [vmem:[#allocation5 + $0x3c8] sm:$0xff]  ;;  %v69_v19 = vld [vmem:[#allocation5 + $0xd0] sm:$0xff]  ;;  %v70_v20 = vld [vmem:[#allocation5 + $0xd8] sm:$0xff] }
  0xd7   :  { %1096 = vmatpush.msra.mxu3 %v518_v42  ;;  %969 = vmatpush.msrb.mxu0 %v95_v24  ;;  %v553_v21 = vld [vmem:[#allocation5 + $0xff0] sm:$0xff]  ;;  %v554_v22 = vld [vmem:[#allocation5 + $0xff8] sm:$0xff]  ;;  %v131_v42 = vld [vmem:[#allocation5 + $0x2c0] sm:$0xff] }
  0xd8   :  { %989 = vmatpush.msrb.mxu1 %v96_v25  ;;  %1077 = vmatpush.msra.mxu2 %v485_v27  ;;  %v132_v23 = vld [vmem:[#allocation5 + $0x2c8] sm:$0xff]  ;;  %v521_v24 = vld [vmem:[#allocation5 + $0xef0] sm:$0xff]  ;;  %v522_v25 = vld [vmem:[#allocation5 + $0xef8] sm:$0xff] }
  0xd9   :  { %1097 = vmatpush.msra.mxu3 %v486_v28  ;;  %970 = vmatpush.msrb.mxu0 %v63_v29  ;;  %v99_v26 = vld [vmem:[#allocation5 + $0x1c0] sm:$0xff]  ;;  %v100_v27 = vld [vmem:[#allocation5 + $0x1c8] sm:$0xff]  ;;  %v489_v28 = vld [vmem:[#allocation5 + $0xdf0] sm:$0xff] }
  0xda   :  { %990 = vmatpush.msrb.mxu1 %v64_v30  ;;  %971 = vmatmul.f32.vlgmr.msrb.gmra.mxu0 %v1448_v53  ;;  %v490_v29 = vld [vmem:[#allocation5 + $0xdf8] sm:$0xff]  ;;  %v67_v30 = vld [vmem:[#allocation5 + $0xc0] sm:$0xff] }
  0xdb   :  { %991 = vmatmul.f32.vlgmr.msrb.gmra.mxu1 %v1448_v53  ;;  %1035 = vmatpush.msra.mxu0 %v547_v31  ;;  %v68_v31 = vld [vmem:[#allocation5 + $0xc8] sm:$0xff] }
  0xdc   :  { %1055 = vmatpush.msra.mxu1 %v548_v32  ;;  %1078 = vmatpush.msra.mxu2 %v453_v33  ;;  %v551_v32 = vld [vmem:[#allocation5 + $0xfe0] sm:$0xff]  ;;  %v552_v33 = vld [vmem:[#allocation5 + $0xfe8] sm:$0xff] }
  0xdd   :  { %1098 = vmatpush.msra.mxu3 %v454_v34  ;;  %1036 = vmatpush.msra.mxu0 %v515_v35  ;;  %v457_v34 = vld [vmem:[#allocation5 + $0xcf0] sm:$0xff]  ;;  %v458_v35 = vld [vmem:[#allocation5 + $0xcf8] sm:$0xff] }
  0xde   :  { %1056 = vmatpush.msra.mxu1 %v516_v36  ;;  %1079 = vmatpush.msra.mxu2 %v421_v37  ;;  %v519_v36 = vld [vmem:[#allocation5 + $0xee0] sm:$0xff]  ;;  %v520_v37 = vld [vmem:[#allocation5 + $0xee8] sm:$0xff] }
  0xdf   :  { %1099 = vmatpush.msra.mxu3 %v422_v38  ;;  %1037 = vmatpush.msra.mxu0 %v483_v39  ;;  %v425_v38 = vld [vmem:[#allocation5 + $0xbf0] sm:$0xff]  ;;  %v426_v39 = vld [vmem:[#allocation5 + $0xbf8] sm:$0xff] }
  0xe0   :  { %1057 = vmatpush.msra.mxu1 %v484_v40  ;;  %1080 = vmatpush.msra.mxu2 %v389_v41  ;;  %v487_v40 = vld [vmem:[#allocation5 + $0xde0] sm:$0xff]  ;;  %v488_v41 = vld [vmem:[#allocation5 + $0xde8] sm:$0xff] }
  0xe1   :  { %1100 = vmatpush.msra.mxu3 %v390_v43  ;;  %1038 = vmatpush.msra.mxu0 %v451_v44  ;;  %v393_v43 = vld [vmem:[#allocation5 + $0xaf0] sm:$0xff]  ;;  %v394_v44 = vld [vmem:[#allocation5 + $0xaf8] sm:$0xff] }
  0xe2   :  { %1058 = vmatpush.msra.mxu1 %v452_v45  ;;  %1081 = vmatpush.msra.mxu2 %v357_v46  ;;  %v455_v45 = vld [vmem:[#allocation5 + $0xce0] sm:$0xff]  ;;  %v456_v46 = vld [vmem:[#allocation5 + $0xce8] sm:$0xff] }
  0xe3   :  { %1101 = vmatpush.msra.mxu3 %v358_v47  ;;  %1039 = vmatpush.msra.mxu0 %v419_v48  ;;  %v361_v47 = vld [vmem:[#allocation5 + $0x9f0] sm:$0xff]  ;;  %v362_v48 = vld [vmem:[#allocation5 + $0x9f8] sm:$0xff] }
  0xe4   :  { %1059 = vmatpush.msra.mxu1 %v420_v49  ;;  %1082 = vmatpush.msra.mxu2 %v325_v50  ;;  %v423_v49 = vld [vmem:[#allocation5 + $0xbe0] sm:$0xff]  ;;  %v424_v50 = vld [vmem:[#allocation5 + $0xbe8] sm:$0xff] }
  0xe5   :  { %1102 = vmatpush.msra.mxu3 %v326_v51  ;;  %1040 = vmatpush.msra.mxu0 %v387_v52  ;;  %v329_v51 = vld [vmem:[#allocation5 + $0x8f0] sm:$0xff]  ;;  %v330_v52 = vld [vmem:[#allocation5 + $0x8f8] sm:$0xff] }
  0xe6   :  { %1060 = vmatpush.msra.mxu1 %v388_v54  ;;  %1083 = vmatpush.msra.mxu2 %v293_v55  ;;  %v391_v54 = vld [vmem:[#allocation5 + $0xae0] sm:$0xff]  ;;  %v392_v55 = vld [vmem:[#allocation5 + $0xae8] sm:$0xff] }
  0xe7   :  { %1103 = vmatpush.msra.mxu3 %v294_v56  ;;  %1041 = vmatpush.msra.mxu0 %v355_v57  ;;  %v297_v56 = vld [vmem:[#allocation5 + $0x7f0] sm:$0xff]  ;;  %v298_v57 = vld [vmem:[#allocation5 + $0x7f8] sm:$0xff] }
  0xe8   :  { %1061 = vmatpush.msra.mxu1 %v356_v58  ;;  %1084 = vmatpush.msra.mxu2 %v261_v59  ;;  %v359_v58 = vld [vmem:[#allocation5 + $0x9e0] sm:$0xff]  ;;  %v360_v59 = vld [vmem:[#allocation5 + $0x9e8] sm:$0xff] }
  0xe9   :  { %1104 = vmatpush.msra.mxu3 %v262_v60  ;;  %1042 = vmatpush.msra.mxu0 %v323_v61  ;;  %v265_v60 = vld [vmem:[#allocation5 + $0x6f0] sm:$0xff]  ;;  %v266_v61 = vld [vmem:[#allocation5 + $0x6f8] sm:$0xff] }
  0xea   :  { %1062 = vmatpush.msra.mxu1 %v324_v62  ;;  %1085 = vmatpush.msra.mxu2 %v229_v63  ;;  %v327_v62 = vld [vmem:[#allocation5 + $0x8e0] sm:$0xff]  ;;  %v328_v63 = vld [vmem:[#allocation5 + $0x8e8] sm:$0xff] }
  0xeb   :  { %1105 = vmatpush.msra.mxu3 %v230_v0  ;;  %1043 = vmatpush.msra.mxu0 %v291_v1  ;;  %v233_v0 = vld [vmem:[#allocation5 + $0x5f0] sm:$0xff]  ;;  %v234_v1 = vld [vmem:[#allocation5 + $0x5f8] sm:$0xff] }
  0xec   :  { %1063 = vmatpush.msra.mxu1 %v292_v2  ;;  %1086 = vmatpush.msra.mxu2 %v197_v3 }
  0xed   :  { %1106 = vmatpush.msra.mxu3 %v198_v4  ;;  %1044 = vmatpush.msra.mxu0 %v259_v5  ;;  %v295_v4 = vld [vmem:[#allocation5 + $0x7e0] sm:$0xff]  ;;  %v296_v5 = vld [vmem:[#allocation5 + $0x7e8] sm:$0xff] }
  0xee   :  { %1064 = vmatpush.msra.mxu1 %v260_v6  ;;  %1087 = vmatpush.msra.mxu2 %v165_v7 }
  0xef   :  { %1107 = vmatpush.msra.mxu3 %v166_v8  ;;  %1045 = vmatpush.msra.mxu0 %v227_v9  ;;  %v201_v8 = vld [vmem:[#allocation5 + $0x4f0] sm:$0xff]  ;;  %v202_v9 = vld [vmem:[#allocation5 + $0x4f8] sm:$0xff] }
  0xf0   :  { %1065 = vmatpush.msra.mxu1 %v228_v10  ;;  %1088 = vmatpush.msra.mxu2 %v133_v11  ;;  %v263_v10 = vld [vmem:[#allocation5 + $0x6e0] sm:$0xff]  ;;  %v264_v11 = vld [vmem:[#allocation5 + $0x6e8] sm:$0xff] }
  0xf1   :  { %1108 = vmatpush.msra.mxu3 %v134_v12  ;;  %1046 = vmatpush.msra.mxu0 %v195_v13  ;;  %v169_v12 = vld [vmem:[#allocation5 + $0x3f0] sm:$0xff]  ;;  %v170_v13 = vld [vmem:[#allocation5 + $0x3f8] sm:$0xff] }
  0xf2   :  { %1066 = vmatpush.msra.mxu1 %v196_v14  ;;  %1089 = vmatpush.msra.mxu2 %v101_v15  ;;  %v231_v14 = vld [vmem:[#allocation5 + $0x5e0] sm:$0xff]  ;;  %v232_v15 = vld [vmem:[#allocation5 + $0x5e8] sm:$0xff] }
  0xf3   :  { %1109 = vmatpush.msra.mxu3 %v102_v16  ;;  %1047 = vmatpush.msra.mxu0 %v163_v17  ;;  %v137_v16 = vld [vmem:[#allocation5 + $0x2f0] sm:$0xff]  ;;  %v138_v17 = vld [vmem:[#allocation5 + $0x2f8] sm:$0xff] }
  0xf4   :  { %1067 = vmatpush.msra.mxu1 %v164_v18  ;;  %1090 = vmatpush.msra.mxu2 %v69_v19  ;;  %v199_v18 = vld [vmem:[#allocation5 + $0x4e0] sm:$0xff]  ;;  %v200_v19 = vld [vmem:[#allocation5 + $0x4e8] sm:$0xff] }
  0xf5   :  { %1110 = vmatpush.msra.mxu3 %v70_v20  ;;  %1048 = vmatpush.msra.mxu0 %v131_v42  ;;  %v105_v20 = vld [vmem:[#allocation5 + $0x1f0] sm:$0xff] }
  0xf6   :  { %1155 = vmatpush.msrb.mxu2 %v553_v21  ;;  %1068 = vmatpush.msra.mxu1 %v132_v23  ;;  %v106_v23 = vld [vmem:[#allocation5 + $0x1f8] sm:$0xff] }
  0xf7   :  { %1175 = vmatpush.msrb.mxu3 %v554_v22  ;;  %1049 = vmatpush.msra.mxu0 %v99_v26 }
  0xf8   :  { %1156 = vmatpush.msrb.mxu2 %v521_v24  ;;  %1069 = vmatpush.msra.mxu1 %v100_v27  ;;  %v167_v24 = vld [vmem:[#allocation5 + $0x3e0] sm:$0xff] }
  0xf9   :  { %1176 = vmatpush.msrb.mxu3 %v522_v25  ;;  %1050 = vmatpush.msra.mxu0 %v67_v30  ;;  %v168_v25 = vld [vmem:[#allocation5 + $0x3e8] sm:$0xff] }
  0xfa   :  { %1157 = vmatpush.msrb.mxu2 %v489_v28  ;;  %1070 = vmatpush.msra.mxu1 %v68_v31  ;;  %v73_v28 = vld [vmem:[#allocation5 + $0xf0] sm:$0xff] }
  0xfb   :  { %1177 = vmatpush.msrb.mxu3 %v490_v29  ;;  %1115 = vmatpush.msrb.mxu0 %v551_v32  ;;  %v74_v29 = vld [vmem:[#allocation5 + $0xf8] sm:$0xff] }
  0xfc   :  { %1135 = vmatpush.msrb.mxu1 %v552_v33  ;;  %1158 = vmatpush.msrb.mxu2 %v457_v34 }
  0xfd   :  { %1178 = vmatpush.msrb.mxu3 %v458_v35  ;;  %1116 = vmatpush.msrb.mxu0 %v519_v36 }
  0xfe   :  { %1136 = vmatpush.msrb.mxu1 %v520_v37  ;;  %1159 = vmatpush.msrb.mxu2 %v425_v38  ;;  %v135_v38 = vld [vmem:[#allocation5 + $0x2e0] sm:$0xff] }
  0xff   :  { %1179 = vmatpush.msrb.mxu3 %v426_v39  ;;  %1117 = vmatpush.msrb.mxu0 %v487_v40  ;;  %v136_v39 = vld [vmem:[#allocation5 + $0x2e8] sm:$0xff] }
 0x100   :  { %1137 = vmatpush.msrb.mxu1 %v488_v41  ;;  %1160 = vmatpush.msrb.mxu2 %v393_v43 }
 0x101   :  { %1180 = vmatpush.msrb.mxu3 %v394_v44  ;;  %1118 = vmatpush.msrb.mxu0 %v455_v45  ;;  %v103_v44 = vld [vmem:[#allocation5 + $0x1e0] sm:$0xff]  ;;  %v104_v45 = vld [vmem:[#allocation5 + $0x1e8] sm:$0xff] }
 0x102   :  { %1138 = vmatpush.msrb.mxu1 %v456_v46  ;;  %1161 = vmatpush.msrb.mxu2 %v361_v47 }
 0x103   :  { %1181 = vmatpush.msrb.mxu3 %v362_v48  ;;  %1119 = vmatpush.msrb.mxu0 %v423_v49  ;;  %v71_v48 = vld [vmem:[#allocation5 + $0xe0] sm:$0xff]  ;;  %v72_v49 = vld [vmem:[#allocation5 + $0xe8] sm:$0xff] }
 0x104   :  { %1139 = vmatpush.msrb.mxu1 %v424_v50  ;;  %1162 = vmatpush.msrb.mxu2 %v329_v51 }
 0x105   :  { %1182 = vmatpush.msrb.mxu3 %v330_v52  ;;  %1120 = vmatpush.msrb.mxu0 %v391_v54 }
 0x106   :  { %1140 = vmatpush.msrb.mxu1 %v392_v55  ;;  %1163 = vmatpush.msrb.mxu2 %v297_v56 }
 0x107   :  { %1183 = vmatpush.msrb.mxu3 %v298_v57  ;;  %1121 = vmatpush.msrb.mxu0 %v359_v58 }
 0x108   :  { %1141 = vmatpush.msrb.mxu1 %v360_v59  ;;  %1164 = vmatpush.msrb.mxu2 %v265_v60  ;;  %v772_v2 = vpop.f32.mrf.mxu2 }
 0x109   :  { %1184 = vmatpush.msrb.mxu3 %v266_v61  ;;  %v792_v3 = vpop.f32.mrf.mxu3  ;;  %1122 = vmatpush.msrb.mxu0 %v327_v62  ;;  %v732_v6 = vpop.f32.mrf.mxu0  ;;  %v1235_v22 = vrot.slane %v772_v2, 6 }
 0x10a   :  { %1142 = vmatpush.msrb.mxu1 %v328_v63  ;;  %v752_v7 = vpop.f32.mrf.mxu1  ;;  %1165 = vmatpush.msrb.mxu2 %v233_v0  ;;  %v1236_v42 = vrot.slane %v792_v3, 5 }
 0x10b   :  { %1185 = vmatpush.msrb.mxu3 %v234_v1  ;;  %1091 = vmatmul.f32.vlgmr.msra.gmra.mxu2 %v1448_v53  ;;  %v1234_v21 = vrot.slane %v752_v7, 7 }
 0x10c   :  { %1111 = vmatmul.f32.vlgmr.msra.gmra.mxu3 %v1448_v53  ;;  %1123 = vmatpush.msrb.mxu0 %v295_v4  ;;  %v1270_v35 = vsel %vm1257_vm1, %v1235_v22, %v1236_v42 }
 0x10d   :  { %1143 = vmatpush.msrb.mxu1 %v296_v5  ;;  %1166 = vmatpush.msrb.mxu2 %v201_v8  ;;  %v1269_v34 = vsel %vm1255_vm0, %v732_v6, %v1234_v21 }
 0x10e   :  { %1186 = vmatpush.msrb.mxu3 %v202_v9  ;;  %1124 = vmatpush.msrb.mxu0 %v263_v10  ;;  %v1271_v43 = vsel %vm1259_vm2, %v1269_v34, %v1270_v35 }
 0x10f   :  { %1144 = vmatpush.msrb.mxu1 %v264_v11  ;;  %1167 = vmatpush.msrb.mxu2 %v169_v12 }
 0x110   :  { %1187 = vmatpush.msrb.mxu3 %v170_v13  ;;  %1125 = vmatpush.msrb.mxu0 %v231_v14 }
 0x111   :  { %1145 = vmatpush.msrb.mxu1 %v232_v15  ;;  %1168 = vmatpush.msrb.mxu2 %v137_v16 }
 0x112   :  { %1188 = vmatpush.msrb.mxu3 %v138_v17  ;;  %1071 = vmatmul.f32.vlgmr.msra.gmra.mxu1 %v1448_v53  ;;  %v852_v26 = vpop.f32.mrf.mxu2 }
 0x113   :  { %1126 = vmatpush.msrb.mxu0 %v199_v18  ;;  %v872_v27 = vpop.f32.mrf.mxu3  ;;  %1146 = vmatpush.msrb.mxu1 %v200_v19  ;;  %v812_v30 = vpop.f32.mrf.mxu0  ;;  %v1239_v32 = vrot.slane %v852_v26, 2 }
 0x114   :  { %1169 = vmatpush.msrb.mxu2 %v105_v20  ;;  %v832_v31 = vpop.f32.mrf.mxu1  ;;  %v1240_v33 = vrot.slane %v872_v27, 1  ;;  %1189 = vmatpush.msrb.mxu3 %v106_v23  ;;  %v1237_v36 = vrot.slane %v812_v30, 4 }
 0x115   :  { %1051 = vmatmul.f32.vlgmr.msra.gmra.mxu0 %v1448_v53  ;;  %v1238_v37 = vrot.slane %v832_v31, 3  ;;  %1147 = vmatpush.msrb.mxu1 %v168_v25 }
 0x116   :  { %1127 = vmatpush.msrb.mxu0 %v167_v24  ;;  %v1273_v40 = vsel %vm1263_vm3, %v1239_v32, %v1240_v33  ;;  %1170 = vmatpush.msrb.mxu2 %v73_v28 }
 0x117   :  { %1190 = vmatpush.msrb.mxu3 %v74_v29  ;;  %v1272_v41 = vsel %vm1261_vm4, %v1237_v36, %v1238_v37  ;;  %1171 = vmatmul.f32.vlgmr.msrb.gmra.mxu2 %v1448_v53 }
 0x118   :  { %1191 = vmatmul.f32.vlgmr.msrb.gmra.mxu3 %v1448_v53  ;;  %v1274_v46 = vsel %vm1265_vm5, %v1272_v41, %v1273_v40  ;;  %1128 = vmatpush.msrb.mxu0 %v135_v38 }
 0x119   :  { %1148 = vmatpush.msrb.mxu1 %v136_v39  ;;  %v1275_v47 = vsel %vm1267_vm6, %v1271_v43, %v1274_v46 }
 0x11a   :  { %1295 = vst [vmem:[#allocation7 + $0x8] sm:$0xff] %v1275_v47  ;;  %1129 = vmatpush.msrb.mxu0 %v103_v44 }
 0x11b   :  { %1149 = vmatpush.msrb.mxu1 %v104_v45 }
 0x11c   :  { %1130 = vmatpush.msrb.mxu0 %v71_v48 }
 0x11d   :  { %1150 = vmatpush.msrb.mxu1 %v72_v49  ;;  %1131 = vmatmul.f32.vlgmr.msrb.gmra.mxu0 %v1448_v53 }
 0x11e   :  { %1151 = vmatmul.f32.vlgmr.msrb.gmra.mxu1 %v1448_v53 }
 0x14c   :  { %v932_v50 = vpop.f32.mrf.mxu2 }
 0x14d   :  { %v952_v51 = vpop.f32.mrf.mxu3  ;;  %v892_v52 = vpop.f32.mrf.mxu0  ;;  %v1242_v56 = vrot.slane %v932_v50, 6 }
 0x14e   :  { %v912_v54 = vpop.f32.mrf.mxu1  ;;  %v1243_v57 = vrot.slane %v952_v51, 5 }
 0x14f   :  { %v1241_v55 = vrot.slane %v912_v54, 7 }
 0x150   :  { %v1277_v1 = vsel %vm1257_vm1, %v1242_v56, %v1243_v57 }
 0x151   :  { %v1276_v0 = vsel %vm1255_vm0, %v892_v52, %v1241_v55 }
 0x152   :  { %v1278_v5 = vsel %vm1259_vm2, %v1276_v0, %v1277_v1 }
 0x156   :  { %v1012_v58 = vpop.f32.mrf.mxu2 }
 0x157   :  { %v1032_v59 = vpop.f32.mrf.mxu3  ;;  %v972_v60 = vpop.f32.mrf.mxu0  ;;  %v1246_v62 = vrot.slane %v1012_v58, 2 }
 0x158   :  { %v992_v61 = vpop.f32.mrf.mxu1  ;;  %v1247_v63 = vrot.slane %v1032_v59, 1  ;;  %v1244_v2 = vrot.slane %v972_v60, 4 }
 0x159   :  { %v1245_v3 = vrot.slane %v992_v61, 3 }
 0x15a   :  { %v1280_v53 = vsel %vm1263_vm3, %v1246_v62, %v1247_v63 }
 0x15b   :  { %v1279_v4 = vsel %vm1261_vm4, %v1244_v2, %v1245_v3 }
 0x15c   :  { %v1281_v6 = vsel %vm1265_vm5, %v1279_v4, %v1280_v53 }
 0x15d   :  { %v1282_v7 = vsel %vm1267_vm6, %v1278_v5, %v1281_v6 }
 0x15e   :  { %1296 = vst [vmem:[#allocation7 + $0x10] sm:$0xff] %v1282_v7 }
 0x18e   :  { %v1092_v10 = vpop.f32.mrf.mxu2 }
 0x18f   :  { %v1072_v9 = vpop.f32.mrf.mxu1  ;;  %v1112_v11 = vpop.f32.mrf.mxu3  ;;  %v1249_v13 = vrot.slane %v1092_v10, 6 }
 0x190   :  { %v1248_v12 = vrot.slane %v1072_v9, 7  ;;  %v1250_v14 = vrot.slane %v1112_v11, 5 }
 0x192   :  { %v1052_v8 = vpop.f32.mrf.mxu0  ;;  %v1284_v21 = vsel %vm1257_vm1, %v1249_v13, %v1250_v14 }
 0x193   :  { %v1283_v22 = vsel %vm1255_vm0, %v1052_v8, %v1248_v12 }
 0x194   :  { %v1285_v26 = vsel %vm1259_vm2, %v1283_v22, %v1284_v21 }
 0x19a   :  { %v1132_v15 = vpop.f32.mrf.mxu0  ;;  %v1172_v19 = vpop.f32.mrf.mxu2 }
 0x19b   :  { %v1152_v16 = vpop.f32.mrf.mxu1  ;;  %v1251_v17 = vrot.slane %v1132_v15, 4  ;;  %v1192_v20 = vpop.f32.mrf.mxu3  ;;  %v1253_v42 = vrot.slane %v1172_v19, 2 }
 0x19c   :  { %v1252_v18 = vrot.slane %v1152_v16, 3  ;;  %v1254_v23 = vrot.slane %v1192_v20, 1 }
 0x19e   :  { %v1286_v24 = vsel %vm1261_vm4, %v1251_v17, %v1252_v18  ;;  %v1287_v25 = vsel %vm1263_vm3, %v1253_v42, %v1254_v23 }
 0x19f   :  { %v1288_v27 = vsel %vm1265_vm5, %v1286_v24, %v1287_v25 }
 0x1a0   :  { %v1289_v28 = vsel %vm1267_vm6, %v1285_v26, %v1288_v27 }
 0x1a1   :  { %1297 = vst [vmem:[#allocation7 + $0x18] sm:$0xff] %v1289_v28 }
 0x1a2   :  { %1308 = dma.vmem_to_hbm [thread:$0]  %s1304_s1, 512, %s1306_s23, [#allocation4]  }
 0x1a3   :  { %1398 = dma.done.wait [#allocation4], 512  }
 0x1a4   :  { %1399 = vsyncadd [#allocation4], 4294966784 }
 0x1a5   :  { %1313 = vsyncpa [#allocation3], 1 }
 0x1a6   :  { %1314 = vsyncpa [#allocation6], 1 }
 0x1a7   :  { %1315 = vsyncpa [#allocation4], 1 }

</bundles_post_ra>
